<compile_context>
chip_gen: v6e
topology: v6e:2x2x1
jax: 0.10.0
libtpu: 0.0.40
codegen_flags: <defaults>
</compile_context>

<pallas_src>
import numpy as np
import jax
import jax.numpy as jnp
from jax.experimental import pallas as pl
from jax.experimental.pallas import tpu as pltpu


# ---------------------------------------------------------------- kernel ----

def _cae_kernel(p1_ref, w1_ref, b1_ref, w2_ref, b2_ref,
                tw1_ref, tb1_ref, tw2_ref, tb2_ref, out_ref):
    f32 = jnp.float32
    bb = out_ref.shape[0]                    # images handled by this grid step

    # ---- conv1(1->16, 3x3, pad 1) + ReLU + 2x2 maxpool : one K=72 matmul ----
    # Rows: (pooled-row-type major, image minor); lanes: pool phase p (x128),
    # pooled column j (x16), channel c.
    o1 = jnp.dot(p1_ref[...], w1_ref[...], preferred_element_type=f32)  # (8bb,512)
    o1 = jnp.maximum(o1 + b1_ref[...], 0.0)
    pooled = jnp.maximum(jnp.maximum(o1[:, 0:128], o1[:, 128:256]),
                         jnp.maximum(o1[:, 256:384], o1[:, 384:512]))   # (8bb,128)

    even = pooled[0:4 * bb, :]      # pooled rows 0,2,4,6   (row = i*bb + img)
    odd = pooled[4 * bb:8 * bb, :]  # pooled rows 1,3,5,7
    zblk = jnp.zeros((bb, 128), f32)

    # ---- conv2 im2col assembled in-register (no VMEM scratch round-trip) ----
    # Output row = i2*bb + img; lane block a (128 wide) holds pooled row
    # 2*i2 - 1 + a of that image (rows -1 / 8 are the zero padding blocks).
    lhs2 = jnp.concatenate(
        [jnp.concatenate([zblk, odd[0:3 * bb, :]], axis=0),    # a=0: -1,1,3,5
         even,                                                 # a=1:  0,2,4,6
         odd,                                                  # a=2:  1,3,5,7
         jnp.concatenate([even[bb:4 * bb, :], zblk], axis=0)], # a=3:  2,4,6,8
        axis=-1)                                                    # (4bb, 512)

    # ---- conv2(16->4, 3x3, pad 1) + ReLU + 2x2 maxpool : one K=512 matmul ---
    o2 = jnp.dot(lhs2, w2_ref[...], preferred_element_type=f32)         # (4bb,64)
    o2 = jnp.maximum(o2 + b2_ref[...], 0.0)
    z = jnp.maximum(jnp.maximum(o2[:, 0:16], o2[:, 16:32]),
                    jnp.maximum(o2[:, 32:48], o2[:, 48:64]))            # (4bb,16)

    # Fold the 4 latent rows i2 into lanes -> one 64-lane row per image.
    zf = jnp.concatenate([z[0:bb, :], z[bb:2 * bb, :],
                          z[2 * bb:3 * bb, :], z[3 * bb:4 * bb, :]],
                         axis=-1)                                       # (bb,64)

    # ---- t_conv1(4->16, 2x2, s2) + ReLU : lane-dense (1024-lane) matmul -----
    h = jnp.dot(zf, tw1_ref[...], preferred_element_type=f32)
    h = jnp.maximum(h + tb1_ref[...], 0.0)                              # (bb,1024)

    # ---- t_conv2(16->1, 2x2, s2) + sigmoid : lane-dense (256-lane) matmul ---
    y = jnp.dot(h, tw2_ref[...], preferred_element_type=f32) + tb2_ref[...]
    out_ref[...] = pl.reciprocal(1.0 + jnp.exp(-y), approx=True)        # (bb,256)


# --------------------------------------------------- one-time weight repack --

def prepare_params(params):
    """Repack PyTorch-layout parameters into the fused matmul operands used by
    the kernel.  Pure XLA, run once at model-load time."""
    w1, b1 = params["conv1_w"], params["conv1_b"]       # (16,1,3,3), (16,)
    w2, b2 = params["conv2_w"], params["conv2_b"]       # (4,16,3,3), (4,)
    tw1, tb1 = params["tconv1_w"], params["tconv1_b"]   # (4,16,2,2), (16,)
    tw2, tb2 = params["tconv2_w"], params["tconv2_b"]   # (16,1,2,2), (1,)

    # conv1 + pool1:  W1[a*18+b, p*128 + j*16 + c] = w1[c,0,kh,kw]
    #   a = dh+kh (row within the 4-row window of a pooled row),
    #   b = 2j+dw+kw (column of the 18-wide zero-padded input row),
    #   p = dh*2+dw the pool phase.
    s1 = np.zeros((4, 18, 2, 2, 8, 3, 3), np.float32)   # a, b, dh, dw, j, kh, kw
    for dh in range(2):
        for dw in range(2):
            for kh in range(3):
                for kw in range(3):
                    for j in range(8):
                        s1[dh + kh, 2 * j + dw + kw, dh, dw, j, kh, kw] = 1.0
    W1 = jnp.einsum("abuvjkl,ckl->abuvjc", jnp.asarray(s1), w1[:, 0]).reshape(72, 512)
    B1 = jnp.tile(b1, 32).reshape(1, 512)

    # conv2 + pool2 (single merged matmul):
    #   W2[a*128 + j*16 + ci, p*16 + j2*4 + co] = w2[co,ci,kh,kw]
    #   with a = dh+kh, j = 2*j2+dw+kw-1 (horizontal padding by omission).
    s2 = np.zeros((4, 8, 2, 2, 4, 3, 3), np.float32)    # a, j, dh, dw, j2, kh, kw
    for dh in range(2):
        for dw in range(2):
            for kh in range(3):
                for kw in range(3):
                    for j2 in range(4):
                        j = 2 * j2 + dw + kw - 1
                        if 0 <= j < 8:
                            s2[dh + kh, j, dh, dw, j2, kh, kw] = 1.0
    W2 = jnp.einsum("ajuvgkl,oikl->ajiuvgo", jnp.asarray(s2), w2).reshape(512, 64)
    B2 = jnp.tile(b2, 16).reshape(1, 64)

    # Decoder with the 4 latent rows i2 folded into lanes (one row per image):
    # t_conv1: input lane = i2*16 + j2*4 + ci; output lane = i2*256 + j2*64
    #          + u*32 + v*16 + co  -> block-diagonal over the 16 (i2,j2) sites.
    base1 = jnp.transpose(tw1, (0, 2, 3, 1)).reshape(4, 64)     # (ci, u*32+v*16+co)
    TW1 = jnp.kron(jnp.eye(16, dtype=jnp.float32), base1)       # (64, 1024)
    TB1 = jnp.tile(tb1, 64).reshape(1, 1024)

    # t_conv2: block-diagonal over the 64 (i2,j2,u,v) pixel sites.
    base2 = tw2[:, 0].reshape(16, 4)                            # (ci, u2*2+v2)
    TW2 = jnp.kron(jnp.eye(64, dtype=jnp.float32), base2)       # (1024, 256)
    TB2 = jnp.tile(tb2, 256).reshape(1, 256)

    return dict(W1=W1, B1=B1, W2=W2, B2=B2,
                TW1=TW1, TB1=TB1, TW2=TW2, TB2=TB2)


# --------------------------------------------------------------- wrappers ----

def _build_p1(x_nchw, bb):
    """im2col slab for the fused conv1+pool1 matmul, bb images per block.
    Global row = blk*8*bb + (par*4 + ii)*bb + img   (pooled row i = 2*ii + par)
    lane       = a*18 + b   (a: one of the 4 input rows feeding pooled row i,
                             b: full zero-padded 18-wide input row)."""
    n_tot = x_nchw.shape[0]
    xpad = jnp.pad(x_nchw[:, 0], ((0, 0), (1, 1), (1, 1)))      # (n_tot, 18, 18)
    par = jnp.arange(2)[:, None, None]
    ii = jnp.arange(4)[None, :, None]
    a = jnp.arange(4)[None, None, :]
    rows = 4 * ii + 2 * par + a                                  # (2, 4, 4)
    pats = xpad[:, rows, :]                                      # (n_tot,2,4,4,18)
    pats = pats.reshape(n_tot // bb, bb, 2, 4, 4, 18)
    pats = jnp.transpose(pats, (0, 2, 3, 1, 4, 5))               # (nb,2,4,bb,4,18)
    return pats.reshape(n_tot * 8, 72)


def cae_forward(prep, x_nchw, block_b=16):
    """Matches CAE.forward (NCHW float32 in / out).  block_b images per grid
    step (16 fills a v5e MXU pass; use 32 on v6e/v7x; must be a multiple of 8
    when smaller than the batch)."""
    N = x_nchw.shape[0]
    bb = N if N <= block_b else block_b
    assert bb == N or bb % 8 == 0, "block_b must be a multiple of 8"
    n_pad = (-N) % bb
    if n_pad:
        x_nchw = jnp.pad(x_nchw, ((0, n_pad), (0, 0), (0, 0), (0, 0)))
    n_tot = N + n_pad

    p1 = _build_p1(x_nchw, bb)                                   # (8*n_tot, 72)

    def full(*shape):
        return pl.BlockSpec(shape, lambda n: (0,) * len(shape))

    weight_elems = (72 * 512 + 512 + 512 * 64 + 64
                    + 64 * 1024 + 1024 + 1024 * 256 + 256)
    cost = pl.CostEstimate(
        flops=2 * n_tot * (8 * 72 * 512 + 4 * 512 * 64 + 64 * 1024 + 1024 * 256),
        transcendentals=512 * n_tot,
        bytes_accessed=n_tot * (8 * 72 + 256) * 4 + weight_elems * 4)

    out = pl.pallas_call(
        _cae_kernel,
        out_shape=jax.ShapeDtypeStruct((n_tot, 256), jnp.float32),
        grid=(n_tot // bb,),
        in_specs=[
            pl.BlockSpec((8 * bb, 72), lambda n: (n, 0)),    # per-block patches
            full(72, 512), full(1, 512),                     # conv1 (+pool1)
            full(512, 64), full(1, 64),                      # conv2 (+pool2)
            full(64, 1024), full(1, 1024),                   # t_conv1
            full(1024, 256), full(1, 256),                   # t_conv2
        ],
        out_specs=pl.BlockSpec((bb, 256), lambda n: (n, 0)),
        compiler_params=pltpu.CompilerParams(
            dimension_semantics=("parallel",)),
        cost_estimate=cost,
    )(p1, prep["W1"], prep["B1"], prep["W2"], prep["B2"],
      prep["TW1"], prep["TB1"], prep["TW2"], prep["TB2"])

    # Undo the lane-major output packing:
    # out[n, i2*64 + j2*16 + u*8 + v*4 + u2*2 + v2] = img[n, 4*i2+2u+u2, 4*j2+2v+v2]
    out = out[:N]
    o = out.reshape(N, 4, 4, 2, 2, 2, 2)            # (n, i2, j2, u, v, u2, v2)
    o = jnp.transpose(o, (0, 1, 3, 5, 2, 4, 6))     # (n, i2, u, u2, j2, v, v2)
    return o.reshape(N, 1, 16, 16)


# ------------------------------------------------------------ model params ---

def init_params(key):
    """Deterministic parameter init with the shapes from CAE.__init__."""
    ks = jax.random.split(key, 8)

    def u(k, shape, fan_in):
        bound = 1.0 / jnp.sqrt(jnp.float32(fan_in))
        return jax.random.uniform(k, shape, jnp.float32, -bound, bound)

    return {
        "conv1_w": u(ks[0], (16, 1, 3, 3), 1 * 9),    # nn.Conv2d(1, 16, 3, 1, 1)
        "conv1_b": u(ks[1], (16,), 1 * 9),
        "conv2_w": u(ks[2], (4, 16, 3, 3), 16 * 9),   # nn.Conv2d(16, 4, 3, 1, 1)
        "conv2_b": u(ks[3], (4,), 16 * 9),
        "tconv1_w": u(ks[4], (4, 16, 2, 2), 4 * 4),   # nn.ConvTranspose2d(4, 16, 2, 2)
        "tconv1_b": u(ks[5], (16,), 4 * 4),
        "tconv2_w": u(ks[6], (16, 1, 2, 2), 16 * 4),  # nn.ConvTranspose2d(16, 1, 2, 2)
        "tconv2_b": u(ks[7], (1,), 16 * 4),
    }


# ------------------------------------------------------- pure-XLA reference --

def _ref_forward(params, x):
    """Reference CAE.forward in plain XLA (for the in-script self-check)."""
    def conv3(h, w, b):
        out = jax.lax.conv_general_dilated(
            h, w, window_strides=(1, 1), padding="SAME",
            dimension_numbers=("NCHW", "OIHW", "NCHW"))
        return out + b[None, :, None, None]

    def pool(h):
        return jax.lax.reduce_window(h, -jnp.inf, jax.lax.max,
                                     (1, 1, 2, 2), (1, 1, 2, 2), "VALID")

    def tconv(h, w, b):  # kernel 2, stride 2: every input pixel -> 2x2 block
        y = jnp.einsum("nihw,iouv->nohuwv", h, w)
        n, co, hh, _, ww, _ = y.shape
        return y.reshape(n, co, 2 * hh, 2 * ww) + b[None, :, None, None]

    h = jax.nn.relu(conv3(x, params["conv1_w"], params["conv1_b"]))
    h = pool(h)
    h = jax.nn.relu(conv3(h, params["conv2_w"], params["conv2_b"]))
    h = pool(h)
    h = jax.nn.relu(tconv(h, params["tconv1_w"], params["tconv1_b"]))
    return jax.nn.sigmoid(tconv(h, params["tconv2_w"], params["tconv2_b"]))


# ------------------------------------------------------------------- main ----

if __name__ == "__main__":
    key = jax.random.PRNGKey(0)
    pkey, xkey = jax.random.split(key)
    params = init_params(pkey)
    prep = prepare_params(params)                     # one-time weight repack
    x = jax.random.uniform(xkey, (32, 1, 16, 16), jnp.float32)   # NCHW

    y = jax.jit(cae_forward)(prep, x)
    y = jax.block_until_ready(y)

    assert y.shape == (32, 1, 16, 16), y.shape
    assert y.dtype == jnp.float32
    # sigmoid range (tiny slack for the approx-reciprocal EUP path)
    assert bool(jnp.all((y >= -1e-5) & (y <= 1.0 + 1e-3)))
    y_ref = _ref_forward(params, x)
    assert bool(jnp.allclose(y, y_ref, atol=2e-3, rtol=2e-3)), (
        float(jnp.max(jnp.abs(y - y_ref))))
    print("KERNEL_OK")
</pallas_src>

<mosaic_0001>
module attributes {stable_mosaic.version = 11 : i64} {
  func.func @_cae_kernel(%arg0: i32, %arg1: memref<128x72xf32, #tpu.memory_space<vmem>>, %arg2: memref<72x512xf32, #tpu.memory_space<vmem>>, %arg3: memref<1x512xf32, #tpu.memory_space<vmem>>, %arg4: memref<512x64xf32, #tpu.memory_space<vmem>>, %arg5: memref<1x64xf32, #tpu.memory_space<vmem>>, %arg6: memref<64x1024xf32, #tpu.memory_space<vmem>>, %arg7: memref<1x1024xf32, #tpu.memory_space<vmem>>, %arg8: memref<1024x256xf32, #tpu.memory_space<vmem>>, %arg9: memref<1x256xf32, #tpu.memory_space<vmem>>, %arg10: memref<16x256xf32, #tpu.memory_space<vmem>>) attributes {dimension_semantics = [#tpu.dimension_semantics<parallel>], iteration_bounds = array<i64: 2>, scalar_prefetch = 0 : i64, scratch_operands = 0 : i64, tpu.core_type = #tpu.core_type<tc>, window_params = [{transform_indices = @transform_0, window_bounds = array<i64: 128, 72>}, {pipeline_mode = #tpu.pipeline_mode<synchronous>, transform_indices = @transform_1, window_bounds = array<i64: 72, 512>}, {pipeline_mode = #tpu.pipeline_mode<synchronous>, transform_indices = @transform_2, window_bounds = array<i64: 1, 512>}, {pipeline_mode = #tpu.pipeline_mode<synchronous>, transform_indices = @transform_3, window_bounds = array<i64: 512, 64>}, {pipeline_mode = #tpu.pipeline_mode<synchronous>, transform_indices = @transform_4, window_bounds = array<i64: 1, 64>}, {pipeline_mode = #tpu.pipeline_mode<synchronous>, transform_indices = @transform_5, window_bounds = array<i64: 64, 1024>}, {pipeline_mode = #tpu.pipeline_mode<synchronous>, transform_indices = @transform_6, window_bounds = array<i64: 1, 1024>}, {pipeline_mode = #tpu.pipeline_mode<synchronous>, transform_indices = @transform_7, window_bounds = array<i64: 1024, 256>}, {pipeline_mode = #tpu.pipeline_mode<synchronous>, transform_indices = @transform_8, window_bounds = array<i64: 1, 256>}, {transform_indices = @transform_9, window_bounds = array<i64: 16, 256>}]} {
    %c0 = arith.constant 0 : index
    %c0_0 = arith.constant 0 : index
    %0 = vector.load %arg1[%c0, %c0_0] : memref<128x72xf32, #tpu.memory_space<vmem>>, vector<128x72xf32>
    %c0_1 = arith.constant 0 : index
    %c0_2 = arith.constant 0 : index
    %1 = vector.load %arg2[%c0_1, %c0_2] : memref<72x512xf32, #tpu.memory_space<vmem>>, vector<72x512xf32>
    %cst = arith.constant dense<0.000000e+00> : vector<128x512xf32>
    %2 = tpu.matmul %0, %1, %cst {dimension_numbers = #tpu.dot_dimension_numbers<[1], [0], [0], [1], [0, 0, 1, 1], [], []>} : vector<128x72xf32>, vector<72x512xf32>, vector<128x512xf32> -> vector<128x512xf32>
    %c0_3 = arith.constant 0 : index
    %c0_4 = arith.constant 0 : index
    %3 = vector.load %arg3[%c0_3, %c0_4] : memref<1x512xf32, #tpu.memory_space<vmem>>, vector<1x512xf32>
    %4 = vector.broadcast %3 : vector<1x512xf32> to vector<128x512xf32>
    %5 = arith.addf %2, %4 : vector<128x512xf32>
    %cst_5 = arith.constant 0.000000e+00 : f32
    %6 = vector.broadcast %cst_5 : f32 to vector<128x512xf32>
    %7 = arith.maximumf %5, %6 : vector<128x512xf32>
    %8 = vector.extract_strided_slice %7 {offsets = [0, 0], sizes = [128, 128], strides = [1, 1]} : vector<128x512xf32> to vector<128x128xf32>
    %9 = vector.extract_strided_slice %7 {offsets = [0, 128], sizes = [128, 128], strides = [1, 1]} : vector<128x512xf32> to vector<128x128xf32>
    %10 = arith.maximumf %8, %9 : vector<128x128xf32>
    %11 = vector.extract_strided_slice %7 {offsets = [0, 256], sizes = [128, 128], strides = [1, 1]} : vector<128x512xf32> to vector<128x128xf32>
    %12 = vector.extract_strided_slice %7 {offsets = [0, 384], sizes = [128, 128], strides = [1, 1]} : vector<128x512xf32> to vector<128x128xf32>
    %13 = arith.maximumf %11, %12 : vector<128x128xf32>
    %14 = arith.maximumf %10, %13 : vector<128x128xf32>
    %15 = vector.extract_strided_slice %14 {offsets = [0, 0], sizes = [64, 128], strides = [1, 1]} : vector<128x128xf32> to vector<64x128xf32>
    %16 = vector.extract_strided_slice %14 {offsets = [64, 0], sizes = [64, 128], strides = [1, 1]} : vector<128x128xf32> to vector<64x128xf32>
    %cst_6 = arith.constant 0.000000e+00 : f32
    %17 = vector.broadcast %cst_6 : f32 to vector<16x128xf32>
    %18 = vector.extract_strided_slice %16 {offsets = [0, 0], sizes = [48, 128], strides = [1, 1]} : vector<64x128xf32> to vector<48x128xf32>
    %19 = tpu.concatenate %17, %18 in 0 : vector<16x128xf32>, vector<48x128xf32> -> vector<64x128xf32>
    %20 = vector.extract_strided_slice %15 {offsets = [16, 0], sizes = [48, 128], strides = [1, 1]} : vector<64x128xf32> to vector<48x128xf32>
    %21 = tpu.concatenate %20, %17 in 0 : vector<48x128xf32>, vector<16x128xf32> -> vector<64x128xf32>
    %22 = tpu.concatenate %19, %15, %16, %21 in 1 : vector<64x128xf32>, vector<64x128xf32>, vector<64x128xf32>, vector<64x128xf32> -> vector<64x512xf32>
    %c0_7 = arith.constant 0 : index
    %c0_8 = arith.constant 0 : index
    %23 = vector.load %arg4[%c0_7, %c0_8] : memref<512x64xf32, #tpu.memory_space<vmem>>, vector<512x64xf32>
    %cst_9 = arith.constant dense<0.000000e+00> : vector<64x64xf32>
    %24 = tpu.matmul %22, %23, %cst_9 {dimension_numbers = #tpu.dot_dimension_numbers<[1], [0], [0], [1], [0, 0, 1, 1], [], []>} : vector<64x512xf32>, vector<512x64xf32>, vector<64x64xf32> -> vector<64x64xf32>
    %c0_10 = arith.constant 0 : index
    %c0_11 = arith.constant 0 : index
    %25 = vector.load %arg5[%c0_10, %c0_11] : memref<1x64xf32, #tpu.memory_space<vmem>>, vector<1x64xf32>
    %26 = vector.broadcast %25 : vector<1x64xf32> to vector<64x64xf32>
    %27 = arith.addf %24, %26 : vector<64x64xf32>
    %cst_12 = arith.constant 0.000000e+00 : f32
    %28 = vector.broadcast %cst_12 : f32 to vector<64x64xf32>
    %29 = arith.maximumf %27, %28 : vector<64x64xf32>
    %30 = vector.extract_strided_slice %29 {offsets = [0, 0], sizes = [64, 16], strides = [1, 1]} : vector<64x64xf32> to vector<64x16xf32>
    %31 = vector.extract_strided_slice %29 {offsets = [0, 16], sizes = [64, 16], strides = [1, 1]} : vector<64x64xf32> to vector<64x16xf32>
    %32 = arith.maximumf %30, %31 : vector<64x16xf32>
    %33 = vector.extract_strided_slice %29 {offsets = [0, 32], sizes = [64, 16], strides = [1, 1]} : vector<64x64xf32> to vector<64x16xf32>
    %34 = vector.extract_strided_slice %29 {offsets = [0, 48], sizes = [64, 16], strides = [1, 1]} : vector<64x64xf32> to vector<64x16xf32>
    %35 = arith.maximumf %33, %34 : vector<64x16xf32>
    %36 = arith.maximumf %32, %35 : vector<64x16xf32>
    %37 = vector.extract_strided_slice %36 {offsets = [0, 0], sizes = [16, 16], strides = [1, 1]} : vector<64x16xf32> to vector<16x16xf32>
    %38 = vector.extract_strided_slice %36 {offsets = [16, 0], sizes = [16, 16], strides = [1, 1]} : vector<64x16xf32> to vector<16x16xf32>
    %39 = vector.extract_strided_slice %36 {offsets = [32, 0], sizes = [16, 16], strides = [1, 1]} : vector<64x16xf32> to vector<16x16xf32>
    %40 = vector.extract_strided_slice %36 {offsets = [48, 0], sizes = [16, 16], strides = [1, 1]} : vector<64x16xf32> to vector<16x16xf32>
    %41 = tpu.concatenate %37, %38, %39, %40 in 1 : vector<16x16xf32>, vector<16x16xf32>, vector<16x16xf32>, vector<16x16xf32> -> vector<16x64xf32>
    %c0_13 = arith.constant 0 : index
    %c0_14 = arith.constant 0 : index
    %42 = vector.load %arg6[%c0_13, %c0_14] : memref<64x1024xf32, #tpu.memory_space<vmem>>, vector<64x1024xf32>
    %cst_15 = arith.constant dense<0.000000e+00> : vector<16x1024xf32>
    %43 = tpu.matmul %41, %42, %cst_15 {dimension_numbers = #tpu.dot_dimension_numbers<[1], [0], [0], [1], [0, 0, 1, 1], [], []>} : vector<16x64xf32>, vector<64x1024xf32>, vector<16x1024xf32> -> vector<16x1024xf32>
    %c0_16 = arith.constant 0 : index
    %c0_17 = arith.constant 0 : index
    %44 = vector.load %arg7[%c0_16, %c0_17] : memref<1x1024xf32, #tpu.memory_space<vmem>>, vector<1x1024xf32>
    %45 = vector.broadcast %44 : vector<1x1024xf32> to vector<16x1024xf32>
    %46 = arith.addf %43, %45 : vector<16x1024xf32>
    %cst_18 = arith.constant 0.000000e+00 : f32
    %47 = vector.broadcast %cst_18 : f32 to vector<16x1024xf32>
    %48 = arith.maximumf %46, %47 : vector<16x1024xf32>
    %c0_19 = arith.constant 0 : index
    %c0_20 = arith.constant 0 : index
    %49 = vector.load %arg8[%c0_19, %c0_20] : memref<1024x256xf32, #tpu.memory_space<vmem>>, vector<1024x256xf32>
    %cst_21 = arith.constant dense<0.000000e+00> : vector<16x256xf32>
    %50 = tpu.matmul %48, %49, %cst_21 {dimension_numbers = #tpu.dot_dimension_numbers<[1], [0], [0], [1], [0, 0, 1, 1], [], []>} : vector<16x1024xf32>, vector<1024x256xf32>, vector<16x256xf32> -> vector<16x256xf32>
    %c0_22 = arith.constant 0 : index
    %c0_23 = arith.constant 0 : index
    %51 = vector.load %arg9[%c0_22, %c0_23] : memref<1x256xf32, #tpu.memory_space<vmem>>, vector<1x256xf32>
    %52 = vector.broadcast %51 : vector<1x256xf32> to vector<16x256xf32>
    %53 = arith.addf %50, %52 : vector<16x256xf32>
    %cst_24 = arith.constant 0.000000e+00 : f32
    %54 = vector.broadcast %cst_24 : f32 to vector<16x256xf32>
    %55 = arith.subf %54, %53 : vector<16x256xf32>
    %56 = math.exp %55 : vector<16x256xf32>
    %cst_25 = arith.constant 1.000000e+00 : f32
    %57 = vector.broadcast %cst_25 : f32 to vector<16x256xf32>
    %58 = arith.addf %57, %56 : vector<16x256xf32>
    %59 = tpu.reciprocal %58 {approx = true} : vector<16x256xf32> -> vector<16x256xf32>
    %c0_26 = arith.constant 0 : index
    %c0_27 = arith.constant 0 : index
    %60 = vector.load %arg10[%c0_26, %c0_27] : memref<16x256xf32, #tpu.memory_space<vmem>>, vector<16x256xf32>
    tpu.vector_store %arg10[%c0_26, %c0_27], %59 {strides = array<i32>} : memref<16x256xf32, #tpu.memory_space<vmem>>, vector<16x256xf32>,
    return
  }
  func.func @transform_0(%arg0: i32) -> (i32, i32) {
    %c0_i32 = arith.constant 0 : i32
    %c0_i32_0 = arith.constant 0 : i32
    return %arg0, %c0_i32 : i32, i32
  }
  func.func @transform_1(%arg0: i32) -> (i32, i32) {
    %c0_i32 = arith.constant 0 : i32
    %c0_i32_0 = arith.constant 0 : i32
    %c0_i32_1 = arith.constant 0 : i32
    return %c0_i32, %c0_i32_0 : i32, i32
  }
  func.func @transform_2(%arg0: i32) -> (i32, i32) {
    %c0_i32 = arith.constant 0 : i32
    %c0_i32_0 = arith.constant 0 : i32
    %c0_i32_1 = arith.constant 0 : i32
    return %c0_i32, %c0_i32_0 : i32, i32
  }
  func.func @transform_3(%arg0: i32) -> (i32, i32) {
    %c0_i32 = arith.constant 0 : i32
    %c0_i32_0 = arith.constant 0 : i32
    %c0_i32_1 = arith.constant 0 : i32
    return %c0_i32, %c0_i32_0 : i32, i32
  }
  func.func @transform_4(%arg0: i32) -> (i32, i32) {
    %c0_i32 = arith.constant 0 : i32
    %c0_i32_0 = arith.constant 0 : i32
    %c0_i32_1 = arith.constant 0 : i32
    return %c0_i32, %c0_i32_0 : i32, i32
  }
  func.func @transform_5(%arg0: i32) -> (i32, i32) {
    %c0_i32 = arith.constant 0 : i32
    %c0_i32_0 = arith.constant 0 : i32
    %c0_i32_1 = arith.constant 0 : i32
    return %c0_i32, %c0_i32_0 : i32, i32
  }
  func.func @transform_6(%arg0: i32) -> (i32, i32) {
    %c0_i32 = arith.constant 0 : i32
    %c0_i32_0 = arith.constant 0 : i32
    %c0_i32_1 = arith.constant 0 : i32
    return %c0_i32, %c0_i32_0 : i32, i32
  }
  func.func @transform_7(%arg0: i32) -> (i32, i32) {
    %c0_i32 = arith.constant 0 : i32
    %c0_i32_0 = arith.constant 0 : i32
    %c0_i32_1 = arith.constant 0 : i32
    return %c0_i32, %c0_i32_0 : i32, i32
  }
  func.func @transform_8(%arg0: i32) -> (i32, i32) {
    %c0_i32 = arith.constant 0 : i32
    %c0_i32_0 = arith.constant 0 : i32
    %c0_i32_1 = arith.constant 0 : i32
    return %c0_i32, %c0_i32_0 : i32, i32
  }
  func.func @transform_9(%arg0: i32) -> (i32, i32) {
    %c0_i32 = arith.constant 0 : i32
    %c0_i32_0 = arith.constant 0 : i32
    return %arg0, %c0_i32 : i32, i32
  }
}

</mosaic_0001>

<bundles_post_ra>
// kernel: cae_forward.1
= control target key start
LH: loop header
LB: loop body
LE: loop exit
PB: predicated region body
PF: predicated region fallthrough
CT: control target
= control target key end

     0   :  { %s2652_s30 = smov 0   ;;  %s4278_s0 = inlined_call_operand.vmem [shape: f32[256,72], index: 0, kind: input, shape index: {}]   ;;  %s4279_s1 = inlined_call_operand.vmem [shape: f32[72,512], index: 1, kind: input, shape index: {}]   ;;  %s4280_s2 = inlined_call_operand.vmem [shape: f32[1,512], index: 2, kind: input, shape index: {}]   ;;  %s4281_s3 = inlined_call_operand.vmem [shape: f32[512,64], index: 3, kind: input, shape index: {}]   ;;  %s4282_s4 = inlined_call_operand.vmem [shape: f32[1,64], index: 4, kind: input, shape index: {}]   ;;  %s4283_s5 = inlined_call_operand.vmem [shape: f32[64,1024], index: 5, kind: input, shape index: {}]   ;;  %s4284_s6 = inlined_call_operand.vmem [shape: f32[1,1024], index: 6, kind: input, shape index: {}]   ;;  %s4285_s7 = inlined_call_operand.vmem [shape: f32[1024,256], index: 7, kind: input, shape index: {}]   ;;  %s4286_s8 = inlined_call_operand.vmem [shape: f32[1,256], index: 8, kind: input, shape index: {}]   ;;  %s4287_s9 = inlined_call_operand.vmem [shape: f32[32,256], index: 9, kind: output, shape index: {}]  }
   0x1 LB: > { %s2392_s10 = sadd.s32 4294967295, %s2594_s30   ;;  %p2396_p0 = scmp.ge.s32.totalorder %s2594_s30, 1  ;;  %s2594_s30 = sphi %s2652_s30, %s19_s30  }
   0x2   : > { %p288_p1 = scmp.lt.s32.totalorder %s2594_s30, 3 }
   0x4   : > { %p289_p2 = pnand %p2396_p0, %p288_p1 }
   0x5   : > { %s2671_s17 = sshll.u32 (!%p289_p2), %s2392_s10, 4  ;;  %s2597_s16 = smov (!%p289_p2), 112  }
   0x6   : > { %292 = sbr.rel (%p289_p2) target bundleno = 1347 (0x543), region = 56  ;;  %p326_p3 = scmp.lt.s32.totalorder (!%p289_p2), %s2671_s17, 31 }
   0x7   : > { %s2598_s18 = smov (!%p289_p2), 96   ;;  %s2601_s15 = smov (!%p289_p2), 48  }
   0xb   : > { %v387_v0 = vld [vmem:[%s4279_s1 + $0x108] sm:$0xff]  ;;  %v389_v1 = vld [vmem:[%s4279_s1 + $0x118] sm:$0xff]  ;;  %v386_v2 = vld [vmem:[%s4279_s1 + $0x100] sm:$0xff]  ;;  %s4289_s17 = smov (!%p326_p3, %s2671_s17), 31  ;;  %vm412_vm0 = vcmask 588800   ;;  %v2596_v37 = vmov 0.0  }
   0xc   : > { %475 = vmatprep.subr.mxu0 %v387_v0  ;;  %636 = vmatprep.subr.mxu1 %v389_v1  ;;  %v388_v3 = vld [vmem:[%s4279_s1 + $0x110] sm:$0xff]  ;;  %v383_v4 = vld [vmem:[%s4279_s1 + $0xe8] sm:$0xff]  ;;  %v385_v5 = vld [vmem:[%s4279_s1 + $0xf8] sm:$0xff]  ;;  %s2398_s13 = sshll.u32 %s4289_s17, 3  ;;  %vm1288_vm1 = vcmask 130048   ;;  %vm1291_vm2 = vcmask 261120  }
   0xd   : > { %476 = vmatpush1.msra.mxu0 %v386_v2  ;;  %637 = vmatpush1.msra.mxu1 %v388_v3  ;;  %v382_v6 = vld [vmem:[%s4279_s1 + $0xe0] sm:$0xff]  ;;  %v384_v7 = vld [vmem:[%s4279_s1 + $0xf0] sm:$0xff]  ;;  %v379_v8 = vld [vmem:[%s4279_s1 + $0xc8] sm:$0xff]  ;;  %s2776_s28 = scalar_lea.vmem %s4278_s0, %s2398_s13  ;;  %s2600_s13 = smov 32   ;;  %vm1294_vm3 = vcmask 392192   ;;  %vm1403_vm4 = vcmask 523264  }
   0xe   : > { %477 = vmatprep.subr.mxu0 %v383_v4  ;;  %638 = vmatprep.subr.mxu1 %v385_v5  ;;  %v381_v9 = vld [vmem:[%s4279_s1 + $0xd8] sm:$0xff]  ;;  %v378_v10 = vld [vmem:[%s4279_s1 + $0xc0] sm:$0xff]  ;;  %v380_v11 = vld [vmem:[%s4279_s1 + $0xd0] sm:$0xff]  ;;  %s2399_s17 = sshll.u32 %s2392_s10, 1 }
   0xf   : > { %478 = vmatpush1.msra.mxu0 %v382_v6  ;;  %639 = vmatpush1.msra.mxu1 %v384_v7  ;;  %v375_v12 = vld [vmem:[%s4279_s1 + $0xa8] sm:$0xff]  ;;  %v377_v13 = vld [vmem:[%s4279_s1 + $0xb8] sm:$0xff]  ;;  %v374_v14 = vld [vmem:[%s4279_s1 + $0xa0] sm:$0xff]  ;;  %p332_p4 = scmp.lt.s32.totalorder %s2399_s17, 3 }
  0x10   : > { %479 = vmatprep.subr.mxu0 %v379_v8  ;;  %640 = vmatprep.subr.mxu1 %v381_v9  ;;  %v376_v15 = vld [vmem:[%s4279_s1 + $0xb0] sm:$0xff]  ;;  %v371_v16 = vld [vmem:[%s4279_s1 + $0x88] sm:$0xff]  ;;  %v373_v17 = vld [vmem:[%s4279_s1 + $0x98] sm:$0xff] }
  0x11   : > { %480 = vmatpush1.msra.mxu0 %v378_v10  ;;  %641 = vmatpush1.msra.mxu1 %v380_v11  ;;  %v370_v18 = vld [vmem:[%s4279_s1 + $0x80] sm:$0xff]  ;;  %v372_v19 = vld [vmem:[%s4279_s1 + $0x90] sm:$0xff]  ;;  %v367_v20 = vld [vmem:[%s4279_s1 + $0x68] sm:$0xff]  ;;  %s4291_s17 = smov (!%p332_p4, %s2399_s17), 3 }
  0x12   : > { %481 = vmatprep.subr.mxu0 %v375_v12  ;;  %642 = vmatprep.subr.mxu1 %v377_v13  ;;  %v369_v21 = vld [vmem:[%s4279_s1 + $0x78] sm:$0xff]  ;;  %v366_v22 = vld [vmem:[%s4279_s1 + $0x60] sm:$0xff]  ;;  %v368_v23 = vld [vmem:[%s4279_s1 + $0x70] sm:$0xff]  ;;  %s2445_s23 = sshll.u32 %s4291_s17, 4 }
  0x13   : > { %482 = vmatpush1.msra.mxu0 %v374_v14  ;;  %643 = vmatpush1.msra.mxu1 %v376_v15  ;;  %v363_v24 = vld [vmem:[%s4279_s1 + $0x48] sm:$0xff]  ;;  %v365_v25 = vld [vmem:[%s4279_s1 + $0x58] sm:$0xff]  ;;  %v362_v26 = vld [vmem:[%s4279_s1 + $0x40] sm:$0xff] }
  0x14   : > { %483 = vmatprep.subr.mxu0 %v371_v16  ;;  %644 = vmatprep.subr.mxu1 %v373_v17  ;;  %v364_v27 = vld [vmem:[%s4279_s1 + $0x50] sm:$0xff]  ;;  %v359_v28 = vld [vmem:[%s4279_s1 + $0x28] sm:$0xff]  ;;  %v361_v29 = vld [vmem:[%s4279_s1 + $0x38] sm:$0xff] }
  0x15   : > { %484 = vmatpush1.msra.mxu0 %v370_v18  ;;  %645 = vmatpush1.msra.mxu1 %v372_v19  ;;  %v358_v30 = vld [vmem:[%s4279_s1 + $0x20] sm:$0xff]  ;;  %v360_v31 = vld [vmem:[%s4279_s1 + $0x30] sm:$0xff]  ;;  %v355_v32 = vld [vmem:[%s4279_s1 + $0x8] sm:$0xff] }
  0x16   : > { %485 = vmatprep.subr.mxu0 %v367_v20  ;;  %646 = vmatprep.subr.mxu1 %v369_v21  ;;  %v357_v33 = vld [vmem:[%s4279_s1 + $0x18] sm:$0xff]  ;;  %v354_v34 = vld [vmem:[%s4279_s1] sm:$0xff]  ;;  %v356_v35 = vld [vmem:[%s4279_s1 + $0x10] sm:$0xff] }
  0x17   : > { %486 = vmatpush1.msra.mxu0 %v366_v22  ;;  %647 = vmatpush1.msra.mxu1 %v368_v23  ;;  %v338_v36 = vld [vmem:[%s2776_s28] sm:$0xff]  ;;  %v926_v38 = vld [vmem:[%s4281_s3 + $0xf8] sm:$0xff]  ;;  %v339_v42 = vld [vmem:[%s2776_s28 + $0x8] sm:$0xff] }
  0x18   : > { %487 = vmatprep.subr.mxu0 %v363_v24  ;;  %648 = vmatprep.subr.mxu1 %v365_v25  ;;  %v958_v39 = vld [vmem:[%s4281_s3 + $0x1f8] sm:$0xff]  ;;  %v925_v43 = vld [vmem:[%s4281_s3 + $0xf0] sm:$0xff]  ;;  %v924_v48 = vld [vmem:[%s4281_s3 + $0xe8] sm:$0xff] }
  0x19   : > { %488 = vmatpush1.msra.mxu0 %v362_v26  ;;  %649 = vmatpush1.msra.mxu1 %v364_v27  ;;  %v910_v40 = vld [vmem:[%s4281_s3 + $0x78] sm:$0xff]  ;;  %v957_v44 = vld [vmem:[%s4281_s3 + $0x1f0] sm:$0xff]  ;;  %v956_v49 = vld [vmem:[%s4281_s3 + $0x1e8] sm:$0xff] }
  0x1a   : > { %489 = vmatprep.subr.mxu0 %v359_v28  ;;  %650 = vmatprep.subr.mxu1 %v361_v29  ;;  %v942_v41 = vld [vmem:[%s4281_s3 + $0x178] sm:$0xff]  ;;  %v909_v45 = vld [vmem:[%s4281_s3 + $0x70] sm:$0xff]  ;;  %v908_v50 = vld [vmem:[%s4281_s3 + $0x68] sm:$0xff] }
  0x1b   : > { %490 = vmatpush1.msra.mxu0 %v358_v30  ;;  %651 = vmatpush1.msra.mxu1 %v360_v31  ;;  %v941_v46 = vld [vmem:[%s4281_s3 + $0x170] sm:$0xff]  ;;  %v940_v51 = vld [vmem:[%s4281_s3 + $0x168] sm:$0xff]  ;;  %v341_v52 = vld [vmem:[%s2776_s28 + $0x18] sm:$0xff] }
  0x1c   : > { %491 = vmatprep.subr.mxu0 %v355_v32  ;;  %652 = vmatprep.subr.mxu1 %v357_v33  ;;  %v340_v47 = vld [vmem:[%s2776_s28 + $0x10] sm:$0xff]  ;;  %v923_v53 = vld [vmem:[%s4281_s3 + $0xe0] sm:$0xff]  ;;  %v922_v58 = vld [vmem:[%s4281_s3 + $0xd8] sm:$0xff] }
  0x1d   : > { %492 = vmatpush1.msra.mxu0 %v354_v34  ;;  %525 = vmatprep.mubr.f32.mxu0 %v2596_v37  ;;  %v955_v54 = vld [vmem:[%s4281_s3 + $0x1e0] sm:$0xff]  ;;  %v954_v59 = vld [vmem:[%s4281_s3 + $0x1d8] sm:$0xff]  ;;  %v343_v62 = vld [vmem:[%s2776_s28 + $0x28] sm:$0xff] }
  0x1e   : > { %653 = vmatpush1.msra.mxu1 %v356_v35  ;;  %686 = vmatprep.mubr.f32.mxu1 %v2596_v37  ;;  %v907_v55 = vld [vmem:[%s4281_s3 + $0x60] sm:$0xff]  ;;  %v906_v60 = vld [vmem:[%s4281_s3 + $0x58] sm:$0xff]  ;;  %v921_v63 = vld [vmem:[%s4281_s3 + $0xd0] sm:$0xff] }
  0x1f   : > { %2402 = vmatmul.mubr.msk.f32.vlgmr.msra.gmra.mxu0 %vm412_vm0, %v338_v36  ;;  %2418 = vmatmul.mubr.msk.f32.vlgmr.msra.gmra.mxu1 %vm412_vm0, %v338_v36  ;;  %v939_v56 = vld [vmem:[%s4281_s3 + $0x160] sm:$0xff]  ;;  %v938_v61 = vld [vmem:[%s4281_s3 + $0x158] sm:$0xff]  ;;  %v953_v0 = vld [vmem:[%s4281_s3 + $0x1d0] sm:$0xff] }
  0x20   : > { %531 = vmatprep.mubr.f32.mxu0 %v2596_v37  ;;  %692 = vmatprep.mubr.f32.mxu1 %v2596_v37  ;;  %v342_v57 = vld [vmem:[%s2776_s28 + $0x20] sm:$0xff]  ;;  %v905_v1 = vld [vmem:[%s4281_s3 + $0x50] sm:$0xff]  ;;  %v920_v4 = vld [vmem:[%s4281_s3 + $0xc8] sm:$0xff] }
  0x21   : > { %2446 = vmatprep.subr.mxu0 %v926_v38  ;;  %2502 = vmatprep.subr.mxu1 %v958_v39  ;;  %v937_v2 = vld [vmem:[%s4281_s3 + $0x150] sm:$0xff]  ;;  %v904_v5 = vld [vmem:[%s4281_s3 + $0x48] sm:$0xff]  ;;  %v345_v6 = vld [vmem:[%s2776_s28 + $0x38] sm:$0xff] }
  0x22   : > { %2447 = vmatpush3.msra.mxu0 %v910_v40  ;;  %2503 = vmatpush3.msra.mxu1 %v942_v41  ;;  %v344_v3 = vld [vmem:[%s2776_s28 + $0x30] sm:$0xff]  ;;  %v919_v7 = vld [vmem:[%s4281_s3 + $0xc0] sm:$0xff]  ;;  %v918_v10 = vld [vmem:[%s4281_s3 + $0xb8] sm:$0xff] }
  0x23   : > { %2403 = vmatmul.mubr.msk.f32.gmra.mxu0 %vm412_vm0, %v339_v42  ;;  %2419 = vmatmul.mubr.msk.f32.gmra.mxu1 %vm412_vm0, %v339_v42  ;;  %v903_v8 = vld [vmem:[%s4281_s3 + $0x40] sm:$0xff]  ;;  %v902_v11 = vld [vmem:[%s4281_s3 + $0x38] sm:$0xff]  ;;  %v347_v12 = vld [vmem:[%s2776_s28 + $0x48] sm:$0xff] }
  0x24   : > { %537 = vmatprep.mubr.f32.mxu0 %v2596_v37  ;;  %698 = vmatprep.mubr.f32.mxu1 %v2596_v37  ;;  %v346_v9 = vld [vmem:[%s2776_s28 + $0x40] sm:$0xff]  ;;  %v348_v13 = vld [vmem:[%s2776_s28 + $0x50] sm:$0xff]  ;;  %v349_v14 = vld [vmem:[%s2776_s28 + $0x58] sm:$0xff] }
  0x25   : > { %2448 = vmatprep.subr.mxu0 %v925_v43  ;;  %2504 = vmatprep.subr.mxu1 %v957_v44  ;;  %v350_v15 = vld [vmem:[%s2776_s28 + $0x60] sm:$0xff]  ;;  %v351_v16 = vld [vmem:[%s2776_s28 + $0x68] sm:$0xff]  ;;  %v352_v17 = vld [vmem:[%s2776_s28 + $0x70] sm:$0xff] }
  0x26   : > { %2449 = vmatpush3.msra.mxu0 %v909_v45  ;;  %2505 = vmatpush3.msra.mxu1 %v941_v46  ;;  %v353_v18 = vld [vmem:[%s2776_s28 + $0x78] sm:$0xff]  ;;  %v917_v19 = vld [vmem:[%s4281_s3 + $0xb0] sm:$0xff]  ;;  %v916_v21 = vld [vmem:[%s4281_s3 + $0xa8] sm:$0xff]  ;;  %s2599_s28 = smov 16  }
  0x27   : > { %2404 = vmatmul.mubr.msk.f32.gmra.mxu0 %vm412_vm0, %v340_v47  ;;  %2420 = vmatmul.mubr.msk.f32.gmra.mxu1 %vm412_vm0, %v340_v47  ;;  %v901_v20 = vld [vmem:[%s4281_s3 + $0x30] sm:$0xff]  ;;  %v900_v22 = vld [vmem:[%s4281_s3 + $0x28] sm:$0xff]  ;;  %v915_v23 = vld [vmem:[%s4281_s3 + $0xa0] sm:$0xff] }
  0x28   : > { %543 = vmatprep.mubr.f32.mxu0 %v2596_v37  ;;  %704 = vmatprep.mubr.f32.mxu1 %v2596_v37  ;;  %v899_v24 = vld [vmem:[%s4281_s3 + $0x20] sm:$0xff]  ;;  %v914_v25 = vld [vmem:[%s4281_s3 + $0x98] sm:$0xff]  ;;  %v952_v26 = vld [vmem:[%s4281_s3 + $0x1c8] sm:$0xff] }
  0x29   : > { %2450 = vmatprep.subr.mxu0 %v924_v48  ;;  %2506 = vmatprep.subr.mxu1 %v956_v49  ;;  %v936_v27 = vld [vmem:[%s4281_s3 + $0x148] sm:$0xff]  ;;  %v898_v28 = vld [vmem:[%s4281_s3 + $0x18] sm:$0xff]  ;;  %v913_v29 = vld [vmem:[%s4281_s3 + $0x90] sm:$0xff] }
  0x2a   : > { %2451 = vmatpush3.msra.mxu0 %v908_v50  ;;  %2507 = vmatpush3.msra.mxu1 %v940_v51  ;;  %v897_v30 = vld [vmem:[%s4281_s3 + $0x10] sm:$0xff]  ;;  %v912_v31 = vld [vmem:[%s4281_s3 + $0x88] sm:$0xff]  ;;  %v951_v33 = vld [vmem:[%s4281_s3 + $0x1c0] sm:$0xff] }
  0x2b   : > { %2405 = vmatmul.mubr.msk.f32.gmra.mxu0 %vm412_vm0, %v341_v52  ;;  %2421 = vmatmul.mubr.msk.f32.gmra.mxu1 %vm412_vm0, %v341_v52  ;;  %v896_v32 = vld [vmem:[%s4281_s3 + $0x8] sm:$0xff]  ;;  %v935_v34 = vld [vmem:[%s4281_s3 + $0x140] sm:$0xff]  ;;  %v950_v38 = vld [vmem:[%s4281_s3 + $0x1b8] sm:$0xff] }
  0x2c   : > { %549 = vmatprep.mubr.f32.mxu0 %v2596_v37  ;;  %710 = vmatprep.mubr.f32.mxu1 %v2596_v37  ;;  %v911_v35 = vld [vmem:[%s4281_s3 + $0x80] sm:$0xff]  ;;  %v934_v39 = vld [vmem:[%s4281_s3 + $0x138] sm:$0xff]  ;;  %v949_v40 = vld [vmem:[%s4281_s3 + $0x1b0] sm:$0xff] }
  0x2d   : > { %2452 = vmatprep.subr.mxu0 %v923_v53  ;;  %2508 = vmatprep.subr.mxu1 %v955_v54  ;;  %v895_v36 = vld [vmem:[%s4281_s3] sm:$0xff]  ;;  %v933_v41 = vld [vmem:[%s4281_s3 + $0x130] sm:$0xff]  ;;  %v948_v42 = vld [vmem:[%s4281_s3 + $0x1a8] sm:$0xff]  ;;  %v392_v54 = vlaneseq }
  0x2e   : > { %2453 = vmatpush3.msra.mxu0 %v907_v55  ;;  %2509 = vmatpush3.msra.mxu1 %v939_v56  ;;  %v932_v43 = vld [vmem:[%s4281_s3 + $0x128] sm:$0xff]  ;;  %v947_v44 = vld [vmem:[%s4281_s3 + $0x1a0] sm:$0xff]  ;;  %v946_v46 = vld [vmem:[%s4281_s3 + $0x198] sm:$0xff] }
  0x2f   : > { %2406 = vmatmul.mubr.msk.f32.gmra.mxu0 %vm412_vm0, %v342_v57  ;;  %2422 = vmatmul.mubr.msk.f32.gmra.mxu1 %vm412_vm0, %v342_v57  ;;  %v931_v45 = vld [vmem:[%s4281_s3 + $0x120] sm:$0xff]  ;;  %v930_v47 = vld [vmem:[%s4281_s3 + $0x118] sm:$0xff]  ;;  %v945_v48 = vld [vmem:[%s4281_s3 + $0x190] sm:$0xff]  ;;  %v3056_v55 = vshrl.u32 %v392_v54, 7 }
  0x30   : > { %555 = vmatprep.mubr.f32.mxu0 %v2596_v37  ;;  %716 = vmatprep.mubr.f32.mxu1 %v2596_v37  ;;  %v929_v49 = vld [vmem:[%s4281_s3 + $0x110] sm:$0xff]  ;;  %v944_v50 = vld [vmem:[%s4281_s3 + $0x188] sm:$0xff]  ;;  %v943_v52 = vld [vmem:[%s4281_s3 + $0x180] sm:$0xff] }
  0x31   : > { %2454 = vmatprep.subr.mxu0 %v922_v58  ;;  %2510 = vmatprep.subr.mxu1 %v954_v59  ;;  %v928_v51 = vld [vmem:[%s4281_s3 + $0x108] sm:$0xff]  ;;  %v927_v53 = vld [vmem:[%s4281_s3 + $0x100] sm:$0xff]  ;;  %v3059_v56 = vsub.s32 0, %v3056_v55  ;;  %v402_v57 = vsub.s32 2, %v3056_v55  ;;  %v3066_v59 = vsub.s32 1, %v3056_v55 }
  0x32   : > { %2455 = vmatpush3.msra.mxu0 %v906_v60  ;;  %2511 = vmatpush3.msra.mxu1 %v938_v61  ;;  %v390_v58 = vld [vmem:[%s4280_s2] sm:$0xf]  ;;  %v406_v60 = vsub.s32 3, %v3056_v55 }
  0x33   : > { %2407 = vmatmul.mubr.msk.f32.gmra.mxu0 %vm412_vm0, %v343_v62  ;;  %2423 = vmatmul.mubr.msk.f32.gmra.mxu1 %vm412_vm0, %v343_v62  ;;  %v3070_v61 = vrot.slane %v390_v58, %v3059_v56  ;;  %v3074_v62 = vrot.slane %v390_v58, %v402_v57 }
  0x34   : > { %561 = vmatprep.mubr.f32.mxu0 %v2596_v37  ;;  %722 = vmatprep.mubr.f32.mxu1 %v2596_v37 }
  0x35   : > { %2456 = vmatprep.subr.mxu0 %v921_v63  ;;  %2512 = vmatprep.subr.mxu1 %v953_v0  ;;  %v3077_v63 = vrot.slane %v390_v58, %v3066_v59  ;;  %v3081_v0 = vrot.slane %v390_v58, %v406_v60 }
  0x36   : > { %2457 = vmatpush3.msra.mxu0 %v905_v1  ;;  %2513 = vmatpush3.msra.mxu1 %v937_v2 }
  0x37   : > { %2408 = vmatmul.mubr.msk.f32.gmra.mxu0 %vm412_vm0, %v344_v3  ;;  %2424 = vmatmul.mubr.msk.f32.gmra.mxu1 %vm412_vm0, %v344_v3 }
  0x38   : > { %567 = vmatprep.mubr.f32.mxu0 %v2596_v37  ;;  %728 = vmatprep.mubr.f32.mxu1 %v2596_v37 }
  0x39   : > { %2458 = vmatprep.subr.mxu0 %v920_v4  ;;  %2514 = vmatprep.subr.mxu1 %v952_v26 }
  0x3a   : > { %2459 = vmatpush3.msra.mxu0 %v904_v5  ;;  %2515 = vmatpush3.msra.mxu1 %v936_v27 }
  0x3b   : > { %2409 = vmatmul.mubr.msk.f32.gmra.mxu0 %vm412_vm0, %v345_v6  ;;  %2425 = vmatmul.mubr.msk.f32.gmra.mxu1 %vm412_vm0, %v345_v6 }
  0x3c   : > { %573 = vmatprep.mubr.f32.mxu0 %v2596_v37  ;;  %734 = vmatprep.mubr.f32.mxu1 %v2596_v37 }
  0x3d   : > { %2460 = vmatprep.subr.mxu0 %v919_v7  ;;  %2516 = vmatprep.subr.mxu1 %v951_v33 }
  0x3e   : > { %2461 = vmatpush3.msra.mxu0 %v903_v8  ;;  %2517 = vmatpush3.msra.mxu1 %v935_v34 }
  0x3f   : > { %2410 = vmatmul.mubr.msk.f32.gmra.mxu0 %vm412_vm0, %v346_v9  ;;  %2426 = vmatmul.mubr.msk.f32.gmra.mxu1 %vm412_vm0, %v346_v9 }
  0x40   : > { %579 = vmatprep.mubr.f32.mxu0 %v2596_v37  ;;  %740 = vmatprep.mubr.f32.mxu1 %v2596_v37 }
  0x41   : > { %2462 = vmatprep.subr.mxu0 %v918_v10  ;;  %2518 = vmatprep.subr.mxu1 %v950_v38 }
  0x42   : > { %2463 = vmatpush3.msra.mxu0 %v902_v11  ;;  %2519 = vmatpush3.msra.mxu1 %v934_v39 }
  0x43   : > { %2411 = vmatmul.mubr.msk.f32.gmra.mxu0 %vm412_vm0, %v347_v12  ;;  %2427 = vmatmul.mubr.msk.f32.gmra.mxu1 %vm412_vm0, %v347_v12 }
  0x44   : > { %585 = vmatprep.mubr.f32.mxu0 %v2596_v37  ;;  %746 = vmatprep.mubr.f32.mxu1 %v2596_v37 }
  0x45   : > { %2464 = vmatprep.subr.mxu0 %v917_v19  ;;  %2520 = vmatprep.subr.mxu1 %v949_v40 }
  0x46   : > { %2465 = vmatpush3.msra.mxu0 %v901_v20  ;;  %2521 = vmatpush3.msra.mxu1 %v933_v41 }
  0x47   : > { %2412 = vmatmul.mubr.msk.f32.gmra.mxu0 %vm412_vm0, %v348_v13  ;;  %2428 = vmatmul.mubr.msk.f32.gmra.mxu1 %vm412_vm0, %v348_v13 }
  0x48   : > { %591 = vmatprep.mubr.f32.mxu0 %v2596_v37  ;;  %752 = vmatprep.mubr.f32.mxu1 %v2596_v37 }
  0x49   : > { %2466 = vmatprep.subr.mxu0 %v916_v21  ;;  %2522 = vmatprep.subr.mxu1 %v948_v42 }
  0x4a   : > { %2467 = vmatpush3.msra.mxu0 %v900_v22  ;;  %2523 = vmatpush3.msra.mxu1 %v932_v43 }
  0x4b   : > { %2413 = vmatmul.mubr.msk.f32.gmra.mxu0 %vm412_vm0, %v349_v14  ;;  %2429 = vmatmul.mubr.msk.f32.gmra.mxu1 %vm412_vm0, %v349_v14 }
  0x4c   : > { %597 = vmatprep.mubr.f32.mxu0 %v2596_v37  ;;  %758 = vmatprep.mubr.f32.mxu1 %v2596_v37 }
  0x4d   : > { %2468 = vmatprep.subr.mxu0 %v915_v23  ;;  %2524 = vmatprep.subr.mxu1 %v947_v44 }
  0x4e   : > { %2469 = vmatpush3.msra.mxu0 %v899_v24  ;;  %2525 = vmatpush3.msra.mxu1 %v931_v45 }
  0x4f   : > { %2414 = vmatmul.mubr.msk.f32.gmra.mxu0 %vm412_vm0, %v350_v15  ;;  %2430 = vmatmul.mubr.msk.f32.gmra.mxu1 %vm412_vm0, %v350_v15 }
  0x50   : > { %603 = vmatprep.mubr.f32.mxu0 %v2596_v37  ;;  %764 = vmatprep.mubr.f32.mxu1 %v2596_v37 }
  0x51   : > { %2470 = vmatprep.subr.mxu0 %v914_v25  ;;  %2526 = vmatprep.subr.mxu1 %v946_v46 }
  0x52   : > { %2471 = vmatpush3.msra.mxu0 %v898_v28  ;;  %2527 = vmatpush3.msra.mxu1 %v930_v47 }
  0x53   : > { %2415 = vmatmul.mubr.msk.f32.gmra.mxu0 %vm412_vm0, %v351_v16  ;;  %2431 = vmatmul.mubr.msk.f32.gmra.mxu1 %vm412_vm0, %v351_v16 }
  0x54   : > { %609 = vmatprep.mubr.f32.mxu0 %v2596_v37  ;;  %770 = vmatprep.mubr.f32.mxu1 %v2596_v37 }
  0x55   : > { %2472 = vmatprep.subr.mxu0 %v913_v29  ;;  %2528 = vmatprep.subr.mxu1 %v945_v48 }
  0x56   : > { %2473 = vmatpush3.msra.mxu0 %v897_v30  ;;  %2529 = vmatpush3.msra.mxu1 %v929_v49 }
  0x57   : > { %2416 = vmatmul.mubr.msk.f32.gmra.mxu0 %vm412_vm0, %v352_v17  ;;  %2432 = vmatmul.mubr.msk.f32.gmra.mxu1 %vm412_vm0, %v352_v17 }
  0x58   : > { %615 = vmatprep.mubr.f32.mxu0 %v2596_v37  ;;  %776 = vmatprep.mubr.f32.mxu1 %v2596_v37 }
  0x59   : > { %2474 = vmatprep.subr.mxu0 %v912_v31  ;;  %2530 = vmatprep.subr.mxu1 %v944_v50 }
  0x5a   : > { %2475 = vmatpush3.msra.mxu0 %v896_v32  ;;  %2531 = vmatpush3.msra.mxu1 %v928_v51 }
  0x5b   : > { %2417 = vmatmul.mubr.msk.f32.gmra.mxu0 %vm412_vm0, %v353_v18  ;;  %2433 = vmatmul.mubr.msk.f32.gmra.mxu1 %vm412_vm0, %v353_v18 }
  0x5c   : > { %2476 = vmatprep.subr.mxu0 %v911_v35  ;;  %2532 = vmatprep.subr.mxu1 %v943_v52 }
  0x5d   : > { %2477 = vmatpush3.msra.mxu0 %v895_v36  ;;  %2533 = vmatpush3.msra.mxu1 %v927_v53 }
  0xdf   : > { %v527_v1 = vpop.f32.mrf.mxu0  ;;  %v688_v2 = vpop.f32.mrf.mxu1 }
  0xe0   : > { %v528_v3 = vadd.f32 %v527_v1, %v3070_v61  ;;  %v689_v4 = vadd.f32 %v688_v2, %v3074_v62 }
  0xe1   : > { %v529_v5 = vpop.f32.mrf.mxu0  ;;  %v690_v6 = vpop.f32.mrf.mxu1 }
  0xe2   : > { %v530_v7 = vadd.f32 %v529_v5, %v3077_v63  ;;  %v691_v8 = vadd.f32 %v690_v6, %v3081_v0  ;;  %v783_v11 = vmax.f32 %v528_v3, 0.0  ;;  %v785_v12 = vmax.f32 %v689_v4, 0.0 }
  0xe3   : > { %v533_v9 = vpop.f32.mrf.mxu0  ;;  %v694_v10 = vpop.f32.mrf.mxu1 }
  0xe4   : > { %v784_v13 = vmax.f32 %v530_v7, 0.0  ;;  %v786_v14 = vmax.f32 %v691_v8, 0.0  ;;  %v534_v15 = vadd.f32 %v533_v9, %v3070_v61  ;;  %v695_v16 = vadd.f32 %v694_v10, %v3074_v62 }
  0xe5   : > { %v535_v17 = vpop.f32.mrf.mxu0  ;;  %v696_v18 = vpop.f32.mrf.mxu1 }
  0xe6   : > { %v847_v19 = vmax.f32 %v783_v11, %v784_v13  ;;  %v863_v20 = vmax.f32 %v785_v12, %v786_v14  ;;  %v536_v21 = vadd.f32 %v535_v17, %v3077_v63  ;;  %v697_v22 = vadd.f32 %v696_v18, %v3081_v0 }
  0xe7   : > { %v539_v23 = vpop.f32.mrf.mxu0  ;;  %v700_v24 = vpop.f32.mrf.mxu1  ;;  %v787_v28 = vmax.f32 %v534_v15, 0.0  ;;  %v789_v29 = vmax.f32 %v695_v16, 0.0 }
  0xe8   : > { %v540_v25 = vadd.f32 %v539_v23, %v3070_v61  ;;  %v701_v26 = vadd.f32 %v700_v24, %v3074_v62  ;;  %v879_v27 = vmax.f32 %v847_v19, %v863_v20  ;;  %v788_v30 = vmax.f32 %v536_v21, 0.0 }
  0xe9   : > { %v790_v31 = vmax.f32 %v697_v22, 0.0  ;;  %v541_v32 = vpop.f32.mrf.mxu0  ;;  %v702_v33 = vpop.f32.mrf.mxu1 }
  0xea   : > { %v542_v34 = vadd.f32 %v541_v32, %v3077_v63  ;;  %v703_v35 = vadd.f32 %v702_v33, %v3081_v0  ;;  %1030 = vmatprep.mubr.f32.mxu0 %v879_v27  ;;  %v848_v36 = vmax.f32 %v787_v28, %v788_v30  ;;  %v791_v41 = vmax.f32 %v540_v25, 0.0 }
  0xeb   : > { %v864_v38 = vmax.f32 %v789_v29, %v790_v31  ;;  %v545_v39 = vpop.f32.mrf.mxu0  ;;  %v706_v40 = vpop.f32.mrf.mxu1  ;;  %1031 = vmatmul.mubr.f32.vlgmr.msra.gmra.mxu0 %v2596_v37  ;;  %v793_v42 = vmax.f32 %v701_v26, 0.0 }
  0xec   : > { %v792_v43 = vmax.f32 %v542_v34, 0.0  ;;  %v794_v44 = vmax.f32 %v703_v35, 0.0  ;;  %v546_v6 = vadd.f32 %v545_v39, %v3070_v61  ;;  %v707_v7 = vadd.f32 %v706_v40, %v3074_v62 }
  0xed   : > { %v547_v45 = vpop.f32.mrf.mxu0  ;;  %v708_v46 = vpop.f32.mrf.mxu1  ;;  %v880_v47 = vmax.f32 %v848_v36, %v864_v38 }
  0xee   : > { %v849_v48 = vmax.f32 %v791_v41, %v792_v43  ;;  %v865_v49 = vmax.f32 %v793_v42, %v794_v44  ;;  %v548_v2 = vadd.f32 %v547_v45, %v3077_v63  ;;  %v709_v3 = vadd.f32 %v708_v46, %v3081_v0 }
  0xef   : > { %1035 = vmatprep.mubr.f32.mxu0 %v880_v47  ;;  %v551_v50 = vpop.f32.mrf.mxu0  ;;  %v712_v51 = vpop.f32.mrf.mxu1  ;;  %v795_v16 = vmax.f32 %v546_v6, 0.0  ;;  %v797_v17 = vmax.f32 %v707_v7, 0.0 }
  0xf0   : > { %1036 = vmatmul.mubr.f32.gmra.mxu0 %v2596_v37  ;;  %v881_v52 = vmax.f32 %v849_v48, %v865_v49  ;;  %v796_v10 = vmax.f32 %v548_v2, 0.0  ;;  %v798_v11 = vmax.f32 %v709_v3, 0.0  ;;  %v552_v18 = vadd.f32 %v551_v50, %v3070_v61 }
  0xf1   : > { %v553_v53 = vpop.f32.mrf.mxu0  ;;  %v714_v54 = vpop.f32.mrf.mxu1  ;;  %v713_v19 = vadd.f32 %v712_v51, %v3074_v62 }
  0xf2   : > { %1040 = vmatprep.mubr.f32.mxu0 %v881_v52  ;;  %1135 = vmatprep.mubr.f32.mxu1 %v881_v52  ;;  %v554_v12 = vadd.f32 %v553_v53, %v3077_v63  ;;  %v715_v13 = vadd.f32 %v714_v54, %v3081_v0  ;;  %v850_v22 = vmax.f32 %v795_v16, %v796_v10  ;;  %v799_v30 = vmax.f32 %v552_v18, 0.0 }
  0xf3   : > { %v557_v58 = vpop.f32.mrf.mxu0  ;;  %v718_v1 = vpop.f32.mrf.mxu1  ;;  %v866_v23 = vmax.f32 %v797_v17, %v798_v11  ;;  %v801_v31 = vmax.f32 %v713_v19, 0.0 }
  0xf4   : > { %v800_v24 = vmax.f32 %v554_v12, 0.0  ;;  %v802_v25 = vmax.f32 %v715_v13, 0.0  ;;  %v558_v28 = vadd.f32 %v557_v58, %v3070_v61  ;;  %v719_v32 = vadd.f32 %v718_v1, %v3074_v62 }
  0xf5   : > { %v559_v4 = vpop.f32.mrf.mxu0  ;;  %v720_v5 = vpop.f32.mrf.mxu1  ;;  %v882_v44 = vmax.f32 %v850_v22, %v866_v23 }
  0xf6   : > { %v560_v29 = vadd.f32 %v559_v4, %v3077_v63  ;;  %v721_v33 = vadd.f32 %v720_v5, %v3081_v0  ;;  %v851_v39 = vmax.f32 %v799_v30, %v800_v24  ;;  %v867_v40 = vmax.f32 %v801_v31, %v802_v25 }
  0xf7   : > { %v563_v8 = vpop.f32.mrf.mxu0  ;;  %v724_v9 = vpop.f32.mrf.mxu1  ;;  %v803_v45 = vmax.f32 %v558_v28, 0.0  ;;  %v805_v49 = vmax.f32 %v719_v32, 0.0 }
  0xf8   : > { %v3118_v41 = vadd.f32 %v563_v8, %v3070_v61  ;;  %v804_v46 = vmax.f32 %v560_v29, 0.0  ;;  %v806_v50 = vmax.f32 %v721_v33, 0.0  ;;  %v3123_v51 = vadd.f32 %v724_v9, %v3074_v62 }
  0xf9   : > { %v565_v14 = vpop.f32.mrf.mxu0  ;;  %v726_v15 = vpop.f32.mrf.mxu1  ;;  %v883_v10 = vmax.f32 %v851_v39, %v867_v40 }
  0xfa   : > { %v566_v52 = vadd.f32 %v565_v14, %v3077_v63  ;;  %v807_v4 = vmax.f32 %v3118_v41, 0.0  ;;  %v852_v11 = vmax.f32 %v803_v45, %v804_v46  ;;  %v727_v9 = vadd.f32 %v726_v15, %v3081_v0 }
  0xfb   : > { %v569_v20 = vpop.f32.mrf.mxu0  ;;  %v3105_v21 = vpop.f32.mrf.mxu1  ;;  %v868_v14 = vmax.f32 %v805_v49, %v806_v50 }
  0xfc   : > { %v808_v16 = vmax.f32 %v566_v52, 0.0  ;;  %v3133_v23 = vadd.f32 %v569_v20, %v3070_v61 }
  0xfd   : > { %v3107_v26 = vpop.f32.mrf.mxu0  ;;  %v3109_v27 = vpop.f32.mrf.mxu1 }
  0xff   : > { %v575_v34 = vpop.f32.mrf.mxu0  ;;  %v736_v35 = vpop.f32.mrf.mxu1 }
 0x100   : > { %v576_v36 = vadd.f32 %v575_v34, %v3070_v61  ;;  %v737_v38 = vadd.f32 %v736_v35, %v3074_v62  ;;  %v809_v34 = vmax.f32 %v3123_v51, 0.0  ;;  %v3140_v35 = vadd.f32 %v3105_v21, %v3074_v62 }
 0x101   : > { %v577_v42 = vpop.f32.mrf.mxu0  ;;  %v738_v43 = vpop.f32.mrf.mxu1  ;;  %v853_v21 = vmax.f32 %v807_v4, %v808_v16 }
 0x102   : > { %v578_v47 = vadd.f32 %v577_v42, %v3077_v63  ;;  %v739_v48 = vadd.f32 %v738_v43, %v3081_v0  ;;  %v815_v58 = vmax.f32 %v576_v36, 0.0  ;;  %v817_v1 = vmax.f32 %v737_v38, 0.0 }
 0x103   : > { %v581_v53 = vpop.f32.mrf.mxu0  ;;  %v742_v54 = vpop.f32.mrf.mxu1  ;;  %v810_v38 = vmax.f32 %v727_v9, 0.0  ;;  %v884_v43 = vmax.f32 %v852_v11, %v868_v14 }
 0x104   : > { %v816_v2 = vmax.f32 %v578_v47, 0.0  ;;  %v818_v3 = vmax.f32 %v739_v48, 0.0  ;;  %v582_v5 = vadd.f32 %v581_v53, %v3070_v61  ;;  %v743_v6 = vadd.f32 %v742_v54, %v3074_v62 }
 0x105   : > { %v583_v7 = vpop.f32.mrf.mxu0  ;;  %v744_v8 = vpop.f32.mrf.mxu1  ;;  %v572_v54 = vadd.f32 %v3107_v26, %v3077_v63 }
 0x106   : > { %v855_v12 = vmax.f32 %v815_v58, %v816_v2  ;;  %v871_v13 = vmax.f32 %v817_v1, %v818_v3  ;;  %v584_v17 = vadd.f32 %v583_v7, %v3077_v63  ;;  %v745_v18 = vadd.f32 %v744_v8, %v3081_v0 }
 0x107   : > { %v587_v19 = vpop.f32.mrf.mxu0  ;;  %v748_v22 = vpop.f32.mrf.mxu1  ;;  %v819_v29 = vmax.f32 %v582_v5, 0.0  ;;  %v821_v15 = vmax.f32 %v743_v6, 0.0  ;;  %v733_v58 = vadd.f32 %v3109_v27, %v3081_v0  ;;  %v869_v2 = vmax.f32 %v809_v34, %v810_v38 }
 0x108   : > { %v588_v24 = vadd.f32 %v587_v19, %v3070_v61  ;;  %v749_v25 = vadd.f32 %v748_v22, %v3074_v62  ;;  %v887_v28 = vmax.f32 %v855_v12, %v871_v13  ;;  %v820_v30 = vmax.f32 %v584_v17, 0.0 }
 0x109   : > { %v822_v31 = vmax.f32 %v745_v18, 0.0  ;;  %v589_v32 = vpop.f32.mrf.mxu0  ;;  %v750_v33 = vpop.f32.mrf.mxu1  ;;  %v812_v16 = vmax.f32 %v572_v54, 0.0  ;;  %v814_v17 = vmax.f32 %v733_v58, 0.0  ;;  %v811_v22 = vmax.f32 %v3133_v23, 0.0 }
 0x10a   : > { %v590_v20 = vadd.f32 %v589_v32, %v3077_v63  ;;  %v751_v36 = vadd.f32 %v750_v33, %v3081_v0  ;;  %1041 = vmatmul.mubr.f32.gmra.mxu0 %v887_v28  ;;  %1136 = vmatmul.mubr.f32.vlgmr.msra.gmra.mxu1 %v887_v28  ;;  %v856_v39 = vmax.f32 %v819_v29, %v820_v30  ;;  %v823_v45 = vmax.f32 %v588_v24, 0.0 }
 0x10b   : > { %v872_v40 = vmax.f32 %v821_v15, %v822_v31  ;;  %v593_v41 = vpop.f32.mrf.mxu0  ;;  %v754_v42 = vpop.f32.mrf.mxu1  ;;  %1045 = vmatprep.mubr.f32.mxu0 %v882_v44  ;;  %1140 = vmatprep.mubr.f32.mxu1 %v882_v44  ;;  %v825_v46 = vmax.f32 %v749_v25, 0.0  ;;  %v813_v24 = vmax.f32 %v3140_v35, 0.0  ;;  %v885_v35 = vmax.f32 %v853_v21, %v869_v2 }
 0x10c   : > { %v824_v47 = vmax.f32 %v590_v20, 0.0  ;;  %v826_v48 = vmax.f32 %v751_v36, 0.0  ;;  %v594_v49 = vadd.f32 %v593_v41, %v3070_v61  ;;  %v755_v50 = vadd.f32 %v754_v42, %v3074_v62 }
 0x10d   : > { %v595_v51 = vpop.f32.mrf.mxu0  ;;  %v756_v52 = vpop.f32.mrf.mxu1  ;;  %v888_v53 = vmax.f32 %v856_v39, %v872_v40  ;;  %v854_v38 = vmax.f32 %v811_v22, %v812_v16  ;;  %v870_v39 = vmax.f32 %v813_v24, %v814_v17 }
 0x10e   : > { %v857_v44 = vmax.f32 %v823_v45, %v824_v47  ;;  %v873_v1 = vmax.f32 %v825_v46, %v826_v48  ;;  %v596_v3 = vadd.f32 %v595_v51, %v3077_v63  ;;  %v757_v4 = vadd.f32 %v756_v52, %v3081_v0 }
 0x10f   : > { %1046 = vmatmul.mubr.f32.gmra.mxu0 %v888_v53  ;;  %1141 = vmatmul.mubr.f32.gmra.mxu1 %v888_v53  ;;  %v599_v5 = vpop.f32.mrf.mxu0  ;;  %v760_v6 = vpop.f32.mrf.mxu1  ;;  %v827_v11 = vmax.f32 %v594_v49, 0.0  ;;  %v829_v27 = vmax.f32 %v755_v50, 0.0 }
 0x110   : > { %v600_v7 = vadd.f32 %v599_v5, %v3070_v61  ;;  %v761_v8 = vadd.f32 %v760_v6, %v3074_v62  ;;  %1050 = vmatprep.mubr.f32.mxu0 %v883_v10  ;;  %1145 = vmatprep.mubr.f32.mxu1 %v883_v10  ;;  %v889_v26 = vmax.f32 %v857_v44, %v873_v1  ;;  %v828_v9 = vmax.f32 %v596_v3, 0.0 }
 0x111   : > { %v830_v12 = vmax.f32 %v757_v4, 0.0  ;;  %v601_v13 = vpop.f32.mrf.mxu0  ;;  %v762_v14 = vpop.f32.mrf.mxu1  ;;  %v886_v1 = vmax.f32 %v854_v38, %v870_v39 }
 0x112   : > { %v602_v18 = vadd.f32 %v601_v13, %v3077_v63  ;;  %v763_v19 = vadd.f32 %v762_v14, %v3081_v0  ;;  %v858_v25 = vmax.f32 %v827_v11, %v828_v9  ;;  %v831_v15 = vmax.f32 %v600_v7, 0.0 }
 0x113   : > { %v874_v28 = vmax.f32 %v829_v27, %v830_v12  ;;  %1051 = vmatmul.mubr.f32.gmra.mxu0 %v889_v26  ;;  %1146 = vmatmul.mubr.f32.gmra.mxu1 %v889_v26  ;;  %v605_v10 = vpop.f32.mrf.mxu0  ;;  %v766_v29 = vpop.f32.mrf.mxu1  ;;  %v833_v30 = vmax.f32 %v761_v8, 0.0 }
 0x114   : > { %v832_v31 = vmax.f32 %v602_v18, 0.0  ;;  %v834_v32 = vmax.f32 %v763_v19, 0.0  ;;  %1055 = vmatprep.mubr.f32.mxu0 %v884_v43  ;;  %1150 = vmatprep.mubr.f32.mxu1 %v884_v43  ;;  %v606_v33 = vadd.f32 %v605_v10, %v3070_v61  ;;  %v767_v34 = vadd.f32 %v766_v29, %v3074_v62 }
 0x115   : > { %v607_v20 = vpop.f32.mrf.mxu0  ;;  %v768_v23 = vpop.f32.mrf.mxu1  ;;  %v890_v36 = vmax.f32 %v858_v25, %v874_v28 }
 0x116   : > { %v859_v40 = vmax.f32 %v831_v15, %v832_v31  ;;  %v875_v41 = vmax.f32 %v833_v30, %v834_v32  ;;  %v608_v42 = vadd.f32 %v607_v20, %v3077_v63  ;;  %v769_v45 = vadd.f32 %v768_v23, %v3081_v0  ;;  %v3177_v31 = vld [vmem:[%s4282_s4] ss:$0 sm:$0xff] }
 0x117   : > { %1056 = vmatmul.mubr.f32.gmra.mxu0 %v890_v36  ;;  %1151 = vmatmul.mubr.f32.gmra.mxu1 %v890_v36  ;;  %v611_v46 = vpop.f32.mrf.mxu0  ;;  %v772_v43 = vpop.f32.mrf.mxu1  ;;  %v835_v21 = vmax.f32 %v606_v33, 0.0  ;;  %v837_v50 = vmax.f32 %v767_v34, 0.0 }
 0x118   : > { %v612_v47 = vadd.f32 %v611_v46, %v3070_v61  ;;  %v773_v48 = vadd.f32 %v772_v43, %v3074_v62  ;;  %1060 = vmatprep.mubr.f32.mxu0 %v885_v35  ;;  %1155 = vmatprep.mubr.f32.mxu1 %v885_v35  ;;  %v891_v49 = vmax.f32 %v859_v40, %v875_v41  ;;  %v836_v51 = vmax.f32 %v608_v42, 0.0 }
 0x119   : > { %v838_v52 = vmax.f32 %v769_v45, 0.0  ;;  %v613_v53 = vpop.f32.mrf.mxu0  ;;  %v774_v54 = vpop.f32.mrf.mxu1 }
 0x11a   : > { %v614_v58 = vadd.f32 %v613_v53, %v3077_v63  ;;  %v775_v44 = vadd.f32 %v774_v54, %v3081_v0  ;;  %v860_v2 = vmax.f32 %v835_v21, %v836_v51  ;;  %v839_v4 = vmax.f32 %v612_v47, 0.0 }
 0x11b   : > { %v876_v3 = vmax.f32 %v837_v50, %v838_v52  ;;  %v841_v5 = vmax.f32 %v773_v48, 0.0  ;;  %1061 = vmatmul.mubr.f32.gmra.mxu0 %v891_v49  ;;  %1156 = vmatmul.mubr.f32.gmra.mxu1 %v891_v49  ;;  %v617_v6 = vpop.f32.mrf.mxu0  ;;  %v778_v7 = vpop.f32.mrf.mxu1 }
 0x11c   : > { %v840_v8 = vmax.f32 %v614_v58, 0.0  ;;  %v842_v26 = vmax.f32 %v775_v44, 0.0  ;;  %v618_v11 = vadd.f32 %v617_v6, %v3070_v61  ;;  %v779_v27 = vadd.f32 %v778_v7, %v3074_v62  ;;  %1065 = vmatprep.mubr.f32.mxu0 %v886_v1  ;;  %1160 = vmatprep.mubr.f32.mxu1 %v886_v1 }
 0x11d   : > { %v619_v9 = vpop.f32.mrf.mxu0  ;;  %v780_v12 = vpop.f32.mrf.mxu1  ;;  %v892_v13 = vmax.f32 %v860_v2, %v876_v3 }
 0x11e   : > { %v861_v14 = vmax.f32 %v839_v4, %v840_v8  ;;  %v877_v16 = vmax.f32 %v841_v5, %v842_v26  ;;  %v843_v17 = vmax.f32 %v618_v11, 0.0  ;;  %v845_v18 = vmax.f32 %v779_v27, 0.0 }
 0x11f   : > { %v620_v19 = vadd.f32 %v619_v9, %v3077_v63  ;;  %v781_v22 = vadd.f32 %v780_v12, %v3081_v0  ;;  %1066 = vmatmul.mubr.f32.gmra.mxu0 %v892_v13  ;;  %1161 = vmatmul.mubr.f32.gmra.mxu1 %v892_v13 }
 0x120   : > { %1165 = vmatprep.mubr.f32.mxu1 %v2596_v37  ;;  %v893_v61 = vmax.f32 %v861_v14, %v877_v16  ;;  %1474 = vmatprep.mubr.f32.mxu0 %v2596_v37 }
 0x121   : > { %v844_v62 = vmax.f32 %v620_v19, 0.0  ;;  %v846_v24 = vmax.f32 %v781_v22, 0.0 }
 0x123   : > { %v862_v25 = vmax.f32 %v843_v17, %v844_v62  ;;  %v878_v28 = vmax.f32 %v845_v18, %v846_v24  ;;  %1166 = vmatmul.mubr.f32.gmra.mxu1 %v893_v61 }
 0x124   : > { %1170 = vmatprep.mubr.f32.mxu1 %v2596_v37 }
 0x125   : > { %v894_v10 = vmax.f32 %v862_v25, %v878_v28 }
 0x127   : > { %1171 = vmatmul.mubr.f32.gmra.mxu1 %v894_v10 }
 0x128   : > { %1551 = vmatprep.mubr.f32.mxu1 %v2596_v37 }
 0x1ab   : > { %v2478_v63 = vpop.f32.mrf.mxu0 }
 0x1ad   : > { %v2479_v0 = vpop.f32.mrf.mxu0 }
 0x1ae   : > { %v2480_v16 = vadd.f32 %v2479_v0, %v2478_v63 }
 0x1b0   : > { %v2481_v29 = vpop.f32.mrf.mxu0  ;;  %v1033_v25 = vadd.f32 %v2480_v16, %v3177_v31  ;;  %v1321_v16 = vld [vmem:[%s4283_s5 + $0xc0] sm:$0xff] }
 0x1b2   : > { %v2482_v15 = vpop.f32.mrf.mxu0 }
 0x1b3   : > { %v2483_v30 = vadd.f32 %v2482_v15, %v2481_v29 }
 0x1b5   : > { %v1038_v32 = vadd.f32 %v2483_v30, %v3177_v31 }
 0x1ca   : > { %v2484_v33 = vpop.f32.mrf.mxu0  ;;  %v2534_v34 = vpop.f32.mrf.mxu1 }
 0x1cc   : > { %v2485_v20 = vpop.f32.mrf.mxu0  ;;  %v2535_v23 = vpop.f32.mrf.mxu1 }
 0x1cd   : > { %v2486_v40 = vadd.f32 %v2485_v20, %v2484_v33  ;;  %v2536_v19 = vadd.f32 %v2535_v23, %v2534_v34 }
 0x1cf   : > { %v2487_v36 = vpop.f32.mrf.mxu0  ;;  %v2537_v35 = vpop.f32.mrf.mxu1  ;;  %v1043_v48 = vadd.f32 %v2486_v40, %v3177_v31  ;;  %v1138_v15 = vadd.f32 %v2536_v19, %v1033_v25  ;;  %v1314_v19 = vld [vmem:[%s4283_s5 + $0x88] sm:$0xff]  ;;  %v1305_v25 = vld [vmem:[%s4283_s5 + $0x40] sm:$0xff] }
 0x1d1   : > { %v2488_v38 = vpop.f32.mrf.mxu0  ;;  %v2538_v39 = vpop.f32.mrf.mxu1  ;;  %v1176_v34 = vmax.f32 %v1138_v15, 0.0 }
 0x1d2   : > { %v2539_v41 = vadd.f32 %v2538_v39, %v2537_v35  ;;  %v2489_v2 = vadd.f32 %v2488_v38, %v2487_v36 }
 0x1d3   : > { %v2490_v42 = vpop.f32.mrf.mxu0  ;;  %v2540_v45 = vpop.f32.mrf.mxu1 }
 0x1d4   : > { %v3180_v46 = vadd.f32 %v2539_v41, %v1038_v32  ;;  %v1048_v26 = vadd.f32 %v2489_v2, %v3177_v31  ;;  %v1347_v2 = vld [vmem:[%s4283_s5 + $0x190] sm:$0xff] }
 0x1d5   : > { %v2491_v43 = vpop.f32.mrf.mxu0  ;;  %v2541_v47 = vpop.f32.mrf.mxu1 }
 0x1d6   : > { %v2542_v49 = vadd.f32 %v2541_v47, %v2540_v45  ;;  %v2492_v54 = vadd.f32 %v2491_v43, %v2490_v42 }
 0x1d7   : > { %v2493_v21 = vpop.f32.mrf.mxu0  ;;  %v2543_v50 = vpop.f32.mrf.mxu1 }
 0x1d8   : > { %v1148_v51 = vadd.f32 %v2542_v49, %v1043_v48  ;;  %v1053_v4 = vadd.f32 %v2492_v54, %v3177_v31  ;;  %v1355_v54 = vld [vmem:[%s4283_s5 + $0x1d0] sm:$0xff] }
 0x1d9   : > { %v2494_v52 = vpop.f32.mrf.mxu0  ;;  %v2544_v53 = vpop.f32.mrf.mxu1 }
 0x1da   : > { %v1178_v58 = vmax.f32 %v1148_v51, 0.0  ;;  %v2545_v5 = vadd.f32 %v2544_v53, %v2543_v50  ;;  %v2495_v28 = vadd.f32 %v2494_v52, %v2493_v21  ;;  %v1354_v50 = vld [vmem:[%s4283_s5 + $0x1c8] sm:$0xff]  ;;  %v1353_v51 = vld [vmem:[%s4283_s5 + $0x1c0] sm:$0xff]  ;;  %v1356_v52 = vld [vmem:[%s4283_s5 + $0x1d8] sm:$0xff] }
 0x1db   : > { %v2496_v44 = vpop.f32.mrf.mxu0  ;;  %v2546_v1 = vpop.f32.mrf.mxu1  ;;  %1426 = vmatprep.subr.mxu0 %v1354_v50  ;;  %1503 = vmatprep.subr.mxu1 %v1356_v52  ;;  %v1357_v52 = vld [vmem:[%s4283_s5 + $0x1e0] sm:$0xff] }
 0x1dc   : > { %1196 = vrot.lane.b32.xlu0 %v1178_v58, %s2597_s16  ;;  %v1153_v9 = vadd.f32 %v2545_v5, %v1048_v26  ;;  %v1058_v32 = vadd.f32 %v2495_v28, %v3177_v31  ;;  %1427 = vmatpush1.msra.mxu0 %v1353_v51  ;;  %v1340_v5 = vld [vmem:[%s4283_s5 + $0x158] sm:$0xff]  ;;  %v1330_v26 = vld [vmem:[%s4283_s5 + $0x108] sm:$0xff] }
 0x1dd   : > { %v2547_v3 = vpop.f32.mrf.mxu1  ;;  %v2497_v7 = vpop.f32.mrf.mxu0  ;;  %1504 = vmatpush1.msra.mxu1 %v1355_v54  ;;  %v1308_v28 = vld [vmem:[%s4283_s5 + $0x58] sm:$0xff]  ;;  %v1359_v54 = vld [vmem:[%s4283_s5 + $0x1f0] sm:$0xff] }
 0x1de   : > { %v2548_v6 = vadd.f32 %v2547_v3, %v2546_v1  ;;  %v2498_v12 = vadd.f32 %v2497_v7, %v2496_v44  ;;  %v1179_v22 = vmax.f32 %v1153_v9, 0.0  ;;  %v1345_v44 = vld [vmem:[%s4283_s5 + $0x180] sm:$0xff]  ;;  %v1348_v1 = vld [vmem:[%s4283_s5 + $0x198] sm:$0xff]  ;;  %v1338_v3 = vld [vmem:[%s4283_s5 + $0x148] sm:$0xff] }
 0x1df   : > { %v2549_v8 = vpop.f32.mrf.mxu1  ;;  %v2499_v17 = vpop.f32.mrf.mxu0  ;;  %1505 = vmatprep.subr.mxu1 %v1348_v1  ;;  %v1339_v7 = vld [vmem:[%s4283_s5 + $0x150] sm:$0xff]  ;;  %v1349_v1 = vld [vmem:[%s4283_s5 + $0x1a0] sm:$0xff] }
 0x1e0   : > { %v1158_v11 = vadd.f32 %v2548_v6, %v1053_v4  ;;  %v1063_v61 = vadd.f32 %v2498_v12, %v3177_v31  ;;  %v1337_v4 = vld [vmem:[%s4283_s5 + $0x140] sm:$0xff]  ;;  %1506 = vmatpush1.msra.mxu1 %v1347_v2  ;;  %v1331_v9 = vld [vmem:[%s4283_s5 + $0x110] sm:$0xff] }
 0x1e1   : > { %v2550_v27 = vpop.f32.mrf.mxu1  ;;  %v2500_v29 = vpop.f32.mrf.mxu0  ;;  %1507 = vmatprep.subr.mxu1 %v1340_v5  ;;  %v1351_v2 = vld [vmem:[%s4283_s5 + $0x1b0] sm:$0xff]  ;;  %v1341_v5 = vld [vmem:[%s4283_s5 + $0x160] sm:$0xff] }
 0x1e2   : > { %v1180_v13 = vmax.f32 %v1158_v11, 0.0  ;;  %v2551_v30 = vadd.f32 %v2550_v27, %v2549_v8  ;;  %v2501_v33 = vadd.f32 %v2500_v29, %v2499_v17  ;;  %v1332_v11 = vld [vmem:[%s4283_s5 + $0x118] sm:$0xff]  ;;  %v1329_v27 = vld [vmem:[%s4283_s5 + $0x100] sm:$0xff]  ;;  %1508 = vmatpush1.msra.mxu1 %v1339_v7 }
 0x1e3   : > { %v2552_v14 = vpop.f32.mrf.mxu1  ;;  %1509 = vmatprep.subr.mxu1 %v1332_v11  ;;  %v1324_v17 = vld [vmem:[%s4283_s5 + $0xd8] sm:$0xff]  ;;  %v1333_v11 = vld [vmem:[%s4283_s5 + $0x120] sm:$0xff] }
 0x1e4   : > { %1200 = vrot.lane.b32.xlu0 %v1180_v13, %s2597_s16  ;;  %v1163_v20 = vadd.f32 %v2551_v30, %v1058_v32  ;;  %v1068_v36 = vadd.f32 %v2501_v33, %v3177_v31  ;;  %v1177_v31 = vmax.f32 %v3180_v46, 0.0  ;;  %1510 = vmatpush1.msra.mxu1 %v1331_v9  ;;  %v1298_v30 = vld [vmem:[%s4283_s5 + $0x8] sm:$0xff]  ;;  %v1299_v32 = vld [vmem:[%s4283_s5 + $0x10] sm:$0xff] }
 0x1e5   : > { %v2553_v18 = vpop.f32.mrf.mxu1  ;;  %1511 = vmatprep.subr.mxu1 %v1324_v17  ;;  %v1358_v33 = vld [vmem:[%s4283_s5 + $0x1e8] sm:$0xff] }
 0x1e6   : > { %v2554_v62 = vadd.f32 %v2553_v18, %v2552_v14  ;;  %v1181_v35 = vmax.f32 %v1163_v20, 0.0  ;;  %v1322_v14 = vld [vmem:[%s4283_s5 + $0xc8] sm:$0xff]  ;;  %v1323_v18 = vld [vmem:[%s4283_s5 + $0xd0] sm:$0xff] }
 0x1e7   : > { %v2555_v24 = vpop.f32.mrf.mxu1  ;;  %1512 = vmatpush1.msra.mxu1 %v1323_v18  ;;  %v1326_v9 = vld [vmem:[%s4283_s5 + $0xe8] sm:$0xff] }
 0x1e8   : > { %1198 = vrot.lane.b32.xlu0 %v1179_v22, %s2597_s16  ;;  %v1168_v10 = vadd.f32 %v2554_v62, %v1063_v61  ;;  %v1316_v61 = vld [vmem:[%s4283_s5 + $0x98] sm:$0xff]  ;;  %v1315_v62 = vld [vmem:[%s4283_s5 + $0x90] sm:$0xff] }
 0x1e9   : > { %v2556_v0 = vpop.f32.mrf.mxu1  ;;  %1513 = vmatprep.subr.mxu1 %v1316_v61 }
 0x1ea   : > { %v1182_v63 = vmax.f32 %v1168_v10, 0.0  ;;  %v2557_v23 = vadd.f32 %v2556_v0, %v2555_v24  ;;  %1514 = vmatpush1.msra.mxu1 %v1315_v62  ;;  %v1306_v24 = vld [vmem:[%s4283_s5 + $0x48] sm:$0xff]  ;;  %v1307_v10 = vld [vmem:[%s4283_s5 + $0x50] sm:$0xff]  ;;  %v1300_v0 = vld [vmem:[%s4283_s5 + $0x18] sm:$0xff] }
 0x1eb   : > { %1515 = vmatprep.subr.mxu1 %v1308_v28  ;;  %v1317_v62 = vld [vmem:[%s4283_s5 + $0xa0] sm:$0xff] }
 0x1ec   : > { %1204 = vrot.lane.b32.xlu1 %v1182_v63, %s2597_s16  ;;  %v1173_v38 = vadd.f32 %v2557_v23, %v1068_v36  ;;  %1516 = vmatpush1.msra.mxu1 %v1307_v10 }
 0x1ed   : > { %1517 = vmatprep.subr.mxu1 %v1300_v0  ;;  %v1302_v0 = vld [vmem:[%s4283_s5 + $0x28] sm:$0xff] }
 0x1ee   : > { %v1183_v39 = vmax.f32 %v1173_v38, 0.0  ;;  %1518 = vmatpush1.msra.mxu1 %v1299_v32  ;;  %v1304_v32 = vld [vmem:[%s4283_s5 + $0x38] sm:$0xff] }
 0x1f0   : > { %1192 = vrot.lane.b32.xlu1 %v1176_v34, %s2597_s16 }
 0x1f4   : > { %1202 = vrot.lane.b32.xlu1 %v1181_v35, %s2597_s16 }
 0x1f8   : > { %1206 = vrot.lane.b32.xlu1 %v1183_v39, %s2597_s16 }
 0x24e   : > { %v1197_v40 = vpop.permute.xlu0 %1196 }
 0x24f   : > { %v3196_v41 = vmax.f32 %v1178_v58, %v1197_v40  ;;  %v1346_v58 = vld [vmem:[%s4283_s5 + $0x188] sm:$0xff] }
 0x250   : > { %1428 = vmatprep.subr.mxu0 %v1346_v58 }
 0x251   : > { %1236 = vrot.lane.b32.xlu0 %v3196_v41, %s2598_s18  ;;  %1429 = vmatpush1.msra.mxu0 %v1345_v44  ;;  %v1352_v44 = vld [vmem:[%s4283_s5 + $0x1b8] sm:$0xff] }
 0x252   : > { %1430 = vmatprep.subr.mxu0 %v1338_v3  ;;  %v1342_v3 = vld [vmem:[%s4283_s5 + $0x168] sm:$0xff] }
 0x253   : > { %1431 = vmatpush1.msra.mxu0 %v1337_v4  ;;  %v1344_v4 = vld [vmem:[%s4283_s5 + $0x178] sm:$0xff] }
 0x254   : > { %1432 = vmatprep.subr.mxu0 %v1330_v26  ;;  %v1336_v26 = vld [vmem:[%s4283_s5 + $0x138] sm:$0xff] }
 0x255   : > { %1433 = vmatpush1.msra.mxu0 %v1329_v27  ;;  %v1335_v27 = vld [vmem:[%s4283_s5 + $0x130] sm:$0xff] }
 0x256   : > { %v1201_v42 = vpop.permute.xlu0 %1200  ;;  %1434 = vmatprep.subr.mxu0 %v1322_v14  ;;  %v1325_v14 = vld [vmem:[%s4283_s5 + $0xe0] sm:$0xff] }
 0x257   : > { %v3200_v45 = vmax.f32 %v1180_v13, %v1201_v42  ;;  %1435 = vmatpush1.msra.mxu0 %v1321_v16  ;;  %v1327_v16 = vld [vmem:[%s4283_s5 + $0xf0] sm:$0xff] }
 0x258   : > { %1436 = vmatprep.subr.mxu0 %v1314_v19  ;;  %v1318_v19 = vld [vmem:[%s4283_s5 + $0xa8] sm:$0xff] }
 0x259   : > { %1240 = vrot.lane.b32.xlu0 %v3200_v45, %s2598_s18 }
 0x25a   : > { %v1199_v43 = vpop.permute.xlu0 %1198 }
 0x25b   : > { %v3208_v48 = vmax.f32 %v1179_v22, %v1199_v43  ;;  %v1313_v22 = vld [vmem:[%s4283_s5 + $0x80] sm:$0xff] }
 0x25c   : > { %1437 = vmatpush1.msra.mxu0 %v1313_v22  ;;  %v1320_v22 = vld [vmem:[%s4283_s5 + $0xb8] sm:$0xff] }
 0x25d   : > { %1194 = vrot.lane.b32.xlu0 %v1177_v31, %s2597_s16  ;;  %1438 = vmatprep.subr.mxu0 %v1306_v24  ;;  %v1319_v24 = vld [vmem:[%s4283_s5 + $0xb0] sm:$0xff] }
 0x25e   : > { %v1205_v47 = vpop.permute.xlu1 %1204  ;;  %1439 = vmatpush1.msra.mxu0 %v1305_v25 }
 0x25f   : > { %v3210_v49 = vmax.f32 %v1182_v63, %v1205_v47  ;;  %v1297_v63 = vld [vmem:[%s4283_s5] sm:$0xff]  ;;  %1440 = vmatprep.subr.mxu0 %v1298_v30 }
 0x260   : > { %1441 = vmatpush1.msra.mxu0 %v1297_v63  ;;  %v1309_v30 = vld [vmem:[%s4283_s5 + $0x60] sm:$0xff]  ;;  %v1311_v63 = vld [vmem:[%s4283_s5 + $0x70] sm:$0xff] }
 0x261   : > { %1238 = vrot.lane.b32.xlu0 %v3208_v48, %s2598_s18  ;;  %1244 = vrot.lane.b32.xlu1 %v3210_v49, %s2598_s18 }
 0x262   : > { %v1193_v21 = vpop.permute.xlu1 %1192  ;;  %1580 = vmatprep.subr.mxu0 %v1358_v33  ;;  %v1301_v33 = vld [vmem:[%s4283_s5 + $0x20] sm:$0xff] }
 0x263   : > { %v3225_v53 = vmax.f32 %v1176_v34, %v1193_v21  ;;  %v1360_v34 = vld [vmem:[%s4283_s5 + $0x1f8] sm:$0xff] }
 0x264   : > { %1657 = vmatprep.subr.mxu1 %v1360_v34  ;;  %v1303_v34 = vld [vmem:[%s4283_s5 + $0x30] sm:$0xff] }
 0x265   : > { %1232 = vrot.lane.b32.xlu1 %v3225_v53, %s2598_s18 }
 0x266   : > { %v1203_v6 = vpop.permute.xlu1 %1202 }
 0x267   : > { %v3256_v8 = vmax.f32 %v1181_v35, %v1203_v6  ;;  %v1343_v6 = vld [vmem:[%s4283_s5 + $0x170] sm:$0xff] }
 0x269   : > { %1242 = vrot.lane.b32.xlu1 %v3256_v8, %s2598_s18 }
 0x26a   : > { %v1207_v12 = vpop.permute.xlu1 %1206 }
 0x26b   : > { %v3272_v13 = vmax.f32 %v1183_v39, %v1207_v12  ;;  %v1328_v12 = vld [vmem:[%s4283_s5 + $0xf8] sm:$0xff] }
 0x26d   : > { %1246 = vrot.lane.b32.xlu1 %v3272_v13, %s2598_s18 }
 0x2c3   : > { %v1237_v29 = vpop.permute.xlu0 %1236 }
 0x2c4   : > { %v1258_v15 = vmax.f32 %v3196_v41, %v1237_v29  ;;  %v1310_v29 = vld [vmem:[%s4283_s5 + $0x68] sm:$0xff] }
 0x2c6   : > { %1266 = vrot.lane.b32.xlu0 %v1258_v15, %s2599_s28  ;;  %v1312_v15 = vld [vmem:[%s4283_s5 + $0x78] sm:$0xff] }
 0x2cb   : > { %v1241_v20 = vpop.permute.xlu0 %1240 }
 0x2cc   : > { %v1260_v23 = vmax.f32 %v3200_v45, %v1241_v20  ;;  %v1765_v20 = vld [vmem:[%s4285_s7 + $0xf8] sm:$0xff] }
 0x2ce   : > { %1274 = vrot.lane.b32.xlu0 %v1260_v23, %s2600_s13  ;;  %v1829_v23 = vld [vmem:[%s4285_s7 + $0x2f8] sm:$0xff] }
 0x2cf   : > { %v1195_v36 = vpop.permute.xlu0 %1194 }
 0x2d0   : > { %v3334_v35 = vmax.f32 %v1177_v31, %v1195_v36  ;;  %v1764_v36 = vld [vmem:[%s4285_s7 + $0xf0] sm:$0xff] }
 0x2d2   : > { %1234 = vrot.lane.b32.xlu0 %v3334_v35, %s2598_s18 }
 0x2d3   : > { %v1245_v38 = vpop.permute.xlu1 %1244  ;;  %v1239_v40 = vpop.permute.xlu0 %1238 }
 0x2d4   : > { %v1262_v39 = vmax.f32 %v3210_v49, %v1245_v38  ;;  %v1259_v42 = vmax.f32 %v3208_v48, %v1239_v40  ;;  %v1763_v38 = vld [vmem:[%s4285_s7 + $0xe8] sm:$0xff]  ;;  %v1762_v40 = vld [vmem:[%s4285_s7 + $0xe0] sm:$0xff] }
 0x2d6   : > { %1282 = vrot.lane.b32.xlu1 %v1262_v39, %s2601_s15  ;;  %v1827_v39 = vld [vmem:[%s4285_s7 + $0x2e8] sm:$0xff] }
 0x2d7   : > { %v1233_v41 = vpop.permute.xlu1 %1232 }
 0x2d8   : > { %v1256_v21 = vmax.f32 %v3225_v53, %v1233_v41  ;;  %v1350_v53 = vld [vmem:[%s4283_s5 + $0x1a8] sm:$0xff]  ;;  %v1761_v41 = vld [vmem:[%s4285_s7 + $0xd8] sm:$0xff] }
 0x2da   : > { %1268 = vrot.lane.b32.xlu1 %v1259_v42, %s2599_s28  ;;  %v1825_v42 = vld [vmem:[%s4285_s7 + $0x2d8] sm:$0xff]  ;;  %s336_s28 = scalar_lea.vmem %s4287_s9, %s2445_s23 }
 0x2db   : > { %v1243_v45 = vpop.permute.xlu1 %1242 }
 0x2dc   : > { %v1261_v43 = vmax.f32 %v3256_v8, %v1243_v45  ;;  %v1334_v8 = vld [vmem:[%s4283_s5 + $0x128] sm:$0xff]  ;;  %v1760_v45 = vld [vmem:[%s4285_s7 + $0xd0] sm:$0xff] }
 0x2de   : > { %1276 = vrot.lane.b32.xlu0 %v1261_v43, %s2600_s13  ;;  %v1824_v43 = vld [vmem:[%s4285_s7 + $0x2d0] sm:$0xff] }
 0x2df   : > { %v1247_v46 = vpop.permute.xlu1 %1246 }
 0x2e0   : > { %v1263_v31 = vmax.f32 %v3272_v13, %v1247_v46  ;;  %v1759_v46 = vld [vmem:[%s4285_s7 + $0xc8] sm:$0xff] }
 0x2e2   : > { %1284 = vrot.lane.b32.xlu1 %v1263_v31, %s2601_s15  ;;  %v1823_v31 = vld [vmem:[%s4285_s7 + $0x2c8] sm:$0xff] }
 0x338   : > { %v1267_v47 = vpop.permute.xlu0 %1266 }
 0x339   : > { %v1289_v50 = vsel %vm1288_vm1, %v1256_v21, %v1267_v47  ;;  %v1758_v47 = vld [vmem:[%s4285_s7 + $0xc0] sm:$0xff] }
 0x33a   : > { %v1822_v21 = vld [vmem:[%s4285_s7 + $0x2c0] sm:$0xff] }
 0x340   : > { %v1275_v49 = vpop.permute.xlu0 %1274 }
 0x341   : > { %v1292_v48 = vsel %vm1291_vm2, %v1289_v50, %v1275_v49  ;;  %v1757_v49 = vld [vmem:[%s4285_s7 + $0xb8] sm:$0xff] }
 0x342   : > { %v1821_v50 = vld [vmem:[%s4285_s7 + $0x2b8] sm:$0xff] }
 0x344   : > { %v1235_v7 = vpop.permute.xlu0 %1234 }
 0x345   : > { %v1257_v17 = vmax.f32 %v3334_v35, %v1235_v7  ;;  %v1828_v35 = vld [vmem:[%s4285_s7 + $0x2f0] sm:$0xff]  ;;  %v1814_v7 = vld [vmem:[%s4285_s7 + $0x280] sm:$0xff] }
 0x348   : > { %v1283_v51 = vpop.permute.xlu1 %1282 }
 0x349   : > { %v3352_v58 = vsel %vm1294_vm3, %v1292_v48, %v1283_v51  ;;  %v1756_v48 = vld [vmem:[%s4285_s7 + $0xb0] sm:$0xff] }
 0x34a   : > { %2435 = vmatmul.mubr.msk.f32.vlgmr.msra.gmra.mxu0 %vm1403_vm4, %v3352_v58  ;;  %2437 = vmatmul.mubr.msk.f32.vlgmr.msra.gmra.mxu1 %vm1403_vm4, %v3352_v58  ;;  %v1820_v51 = vld [vmem:[%s4285_s7 + $0x2b0] sm:$0xff] }
 0x34b   : > { %1581 = vmatpush1.msra.mxu0 %v1357_v52  ;;  %1658 = vmatpush1.msra.mxu1 %v1359_v54  ;;  %v1755_v52 = vld [vmem:[%s4285_s7 + $0xa8] sm:$0xff] }
 0x34c   : > { %1582 = vmatprep.subr.mxu0 %v1350_v53  ;;  %1659 = vmatprep.subr.mxu1 %v1352_v44  ;;  %v1269_v13 = vpop.permute.xlu1 %1268  ;;  %v1819_v54 = vld [vmem:[%s4285_s7 + $0x2a8] sm:$0xff]  ;;  %v1818_v53 = vld [vmem:[%s4285_s7 + $0x2a0] sm:$0xff]  ;;  %v1753_v44 = vld [vmem:[%s4285_s7 + $0x98] sm:$0xff] }
 0x34d   : > { %1583 = vmatpush1.msra.mxu0 %v1349_v1  ;;  %1660 = vmatpush1.msra.mxu1 %v1351_v2  ;;  %v1290_v61 = vsel %vm1288_vm1, %v1257_v17, %v1269_v13  ;;  %v1817_v1 = vld [vmem:[%s4285_s7 + $0x298] sm:$0xff]  ;;  %v1752_v2 = vld [vmem:[%s4285_s7 + $0x90] sm:$0xff]  ;;  %v1746_v13 = vld [vmem:[%s4285_s7 + $0x60] sm:$0xff] }
 0x34e   : > { %1584 = vmatprep.subr.mxu0 %v1342_v3  ;;  %1661 = vmatprep.subr.mxu1 %v1344_v4  ;;  %v1816_v3 = vld [vmem:[%s4285_s7 + $0x290] sm:$0xff]  ;;  %v1751_v4 = vld [vmem:[%s4285_s7 + $0x88] sm:$0xff]  ;;  %v1809_v17 = vld [vmem:[%s4285_s7 + $0x258] sm:$0xff] }
 0x34f   : > { %1585 = vmatpush1.msra.mxu0 %v1341_v5  ;;  %1662 = vmatpush1.msra.mxu1 %v1343_v6  ;;  %v1815_v5 = vld [vmem:[%s4285_s7 + $0x288] sm:$0xff]  ;;  %v1750_v6 = vld [vmem:[%s4285_s7 + $0x80] sm:$0xff] }
 0x350   : > { %1586 = vmatprep.subr.mxu0 %v1334_v8  ;;  %1663 = vmatprep.subr.mxu1 %v1336_v26  ;;  %v1277_v18 = vpop.permute.xlu0 %1276  ;;  %v1749_v8 = vld [vmem:[%s4285_s7 + $0x78] sm:$0xff] }
 0x351   : > { %1587 = vmatpush1.msra.mxu0 %v1333_v11  ;;  %1664 = vmatpush1.msra.mxu1 %v1335_v27  ;;  %v1293_v25 = vsel %vm1291_vm2, %v1290_v61, %v1277_v18  ;;  %v1813_v26 = vld [vmem:[%s4285_s7 + $0x278] sm:$0xff]  ;;  %v1748_v11 = vld [vmem:[%s4285_s7 + $0x70] sm:$0xff]  ;;  %v1807_v61 = vld [vmem:[%s4285_s7 + $0x248] sm:$0xff] }
 0x352   : > { %1588 = vmatprep.subr.mxu0 %v1326_v9  ;;  %1665 = vmatprep.subr.mxu1 %v1328_v12  ;;  %v1812_v27 = vld [vmem:[%s4285_s7 + $0x270] sm:$0xff]  ;;  %v1747_v9 = vld [vmem:[%s4285_s7 + $0x68] sm:$0xff] }
 0x353   : > { %1589 = vmatpush1.msra.mxu0 %v1325_v14  ;;  %1666 = vmatpush1.msra.mxu1 %v1327_v16  ;;  %v1811_v12 = vld [vmem:[%s4285_s7 + $0x268] sm:$0xff]  ;;  %v1810_v14 = vld [vmem:[%s4285_s7 + $0x260] sm:$0xff]  ;;  %v1745_v16 = vld [vmem:[%s4285_s7 + $0x58] sm:$0xff] }
 0x354   : > { %1590 = vmatprep.subr.mxu0 %v1318_v19  ;;  %1667 = vmatprep.subr.mxu1 %v1320_v22  ;;  %v1285_v28 = vpop.permute.xlu1 %1284  ;;  %v1744_v18 = vld [vmem:[%s4285_s7 + $0x50] sm:$0xff]  ;;  %v1743_v22 = vld [vmem:[%s4285_s7 + $0x48] sm:$0xff] }
 0x355   : > { %v1296_v10 = vsel %vm1294_vm3, %v1293_v25, %v1285_v28  ;;  %1480 = vmatprep.mubr.f32.mxu0 %v2596_v37  ;;  %1557 = vmatprep.mubr.f32.mxu1 %v2596_v37  ;;  %v1808_v19 = vld [vmem:[%s4285_s7 + $0x250] sm:$0xff]  ;;  %v1741_v25 = vld [vmem:[%s4285_s7 + $0x38] sm:$0xff] }
 0x356   : > { %1591 = vmatpush1.msra.mxu0 %v1317_v62  ;;  %1668 = vmatpush1.msra.mxu1 %v1319_v24  ;;  %v1742_v62 = vld [vmem:[%s4285_s7 + $0x40] sm:$0xff]  ;;  %v1805_v28 = vld [vmem:[%s4285_s7 + $0x238] sm:$0xff] }
 0x357   : > { %2436 = vmatmul.mubr.msk.f32.gmra.mxu0 %vm1403_vm4, %v1296_v10  ;;  %2438 = vmatmul.mubr.msk.f32.gmra.mxu1 %vm1403_vm4, %v1296_v10  ;;  %v1806_v24 = vld [vmem:[%s4285_s7 + $0x240] sm:$0xff] }
 0x358   : > { %1592 = vmatprep.subr.mxu0 %v1310_v29  ;;  %1669 = vmatprep.subr.mxu1 %v1312_v15  ;;  %v1804_v29 = vld [vmem:[%s4285_s7 + $0x230] sm:$0xff]  ;;  %v1739_v15 = vld [vmem:[%s4285_s7 + $0x28] sm:$0xff] }
 0x359   : > { %1593 = vmatpush1.msra.mxu0 %v1309_v30  ;;  %1670 = vmatpush1.msra.mxu1 %v1311_v63  ;;  %v1803_v30 = vld [vmem:[%s4285_s7 + $0x228] sm:$0xff]  ;;  %v1738_v63 = vld [vmem:[%s4285_s7 + $0x20] sm:$0xff] }
 0x35a   : > { %1594 = vmatprep.subr.mxu0 %v1302_v0  ;;  %1671 = vmatprep.subr.mxu1 %v1304_v32  ;;  %v1802_v0 = vld [vmem:[%s4285_s7 + $0x220] sm:$0xff]  ;;  %v1737_v32 = vld [vmem:[%s4285_s7 + $0x18] sm:$0xff] }
 0x35b   : > { %1595 = vmatpush1.msra.mxu0 %v1301_v33  ;;  %1628 = vmatprep.mubr.f32.mxu0 %v2596_v37  ;;  %v1801_v33 = vld [vmem:[%s4285_s7 + $0x218] sm:$0xff] }
 0x35c   : > { %1672 = vmatpush1.msra.mxu1 %v1303_v34  ;;  %1705 = vmatprep.mubr.f32.mxu1 %v2596_v37  ;;  %v1736_v34 = vld [vmem:[%s4285_s7 + $0x10] sm:$0xff] }
 0x35d   : > { %2439 = vmatmul.mubr.msk.f32.vlgmr.msra.gmra.mxu0 %vm1403_vm4, %v3352_v58  ;;  %2441 = vmatmul.mubr.msk.f32.vlgmr.msra.gmra.mxu1 %vm1403_vm4, %v3352_v58  ;;  %v1754_v58 = vld [vmem:[%s4285_s7 + $0xa0] sm:$0xff] }
 0x35e   : > { %1634 = vmatprep.mubr.f32.mxu0 %v2596_v37  ;;  %1711 = vmatprep.mubr.f32.mxu1 %v2596_v37  ;;  %v1826_v37 = vld [vmem:[%s4285_s7 + $0x2e0] sm:$0xff] }
 0x35f   : > { %2002 = vmatprep.subr.mxu0 %v1765_v20  ;;  %2079 = vmatprep.subr.mxu1 %v1829_v23  ;;  %v1800_v20 = vld [vmem:[%s4285_s7 + $0x210] sm:$0xff]  ;;  %v1735_v23 = vld [vmem:[%s4285_s7 + $0x8] sm:$0xff] }
 0x360   : > { %2003 = vmatpush1.msra.mxu0 %v1764_v36  ;;  %2080 = vmatpush1.msra.mxu1 %v1828_v35  ;;  %v1799_v36 = vld [vmem:[%s4285_s7 + $0x208] sm:$0xff]  ;;  %v1734_v35 = vld [vmem:[%s4285_s7] sm:$0xff] }
 0x361   : > { %2440 = vmatmul.mubr.msk.f32.gmra.mxu0 %vm1403_vm4, %v1296_v10  ;;  %2442 = vmatmul.mubr.msk.f32.gmra.mxu1 %vm1403_vm4, %v1296_v10  ;;  %v1740_v10 = vld [vmem:[%s4285_s7 + $0x30] sm:$0xff] }
 0x362   : > { %2004 = vmatprep.subr.mxu0 %v1763_v38  ;;  %2081 = vmatprep.subr.mxu1 %v1827_v39  ;;  %v1798_v38 = vld [vmem:[%s4285_s7 + $0x200] sm:$0xff]  ;;  %v1797_v39 = vld [vmem:[%s4285_s7 + $0x1f8] sm:$0xff] }
 0x363   : > { %2005 = vmatpush1.msra.mxu0 %v1762_v40  ;;  %2082 = vmatpush1.msra.mxu1 %v1826_v37  ;;  %v1861_v40 = vld [vmem:[%s4285_s7 + $0x3f8] sm:$0xff]  ;;  %v1796_v37 = vld [vmem:[%s4285_s7 + $0x1f0] sm:$0xff] }
 0x364   : > { %2006 = vmatprep.subr.mxu0 %v1761_v41  ;;  %2083 = vmatprep.subr.mxu1 %v1825_v42  ;;  %v1860_v41 = vld [vmem:[%s4285_s7 + $0x3f0] sm:$0xff]  ;;  %v1795_v42 = vld [vmem:[%s4285_s7 + $0x1e8] sm:$0xff] }
 0x365   : > { %2007 = vmatpush1.msra.mxu0 %v1760_v45  ;;  %2084 = vmatpush1.msra.mxu1 %v1824_v43  ;;  %v1859_v45 = vld [vmem:[%s4285_s7 + $0x3e8] sm:$0xff]  ;;  %v1794_v43 = vld [vmem:[%s4285_s7 + $0x1e0] sm:$0xff] }
 0x366   : > { %2008 = vmatprep.subr.mxu0 %v1759_v46  ;;  %2085 = vmatprep.subr.mxu1 %v1823_v31  ;;  %v1858_v46 = vld [vmem:[%s4285_s7 + $0x3e0] sm:$0xff]  ;;  %v1793_v31 = vld [vmem:[%s4285_s7 + $0x1d8] sm:$0xff] }
 0x367   : > { %2009 = vmatpush1.msra.mxu0 %v1758_v47  ;;  %2086 = vmatpush1.msra.mxu1 %v1822_v21  ;;  %v1857_v47 = vld [vmem:[%s4285_s7 + $0x3d8] sm:$0xff]  ;;  %v1792_v21 = vld [vmem:[%s4285_s7 + $0x1d0] sm:$0xff] }
 0x368   : > { %2010 = vmatprep.subr.mxu0 %v1757_v49  ;;  %2087 = vmatprep.subr.mxu1 %v1821_v50  ;;  %v1856_v49 = vld [vmem:[%s4285_s7 + $0x3d0] sm:$0xff]  ;;  %v1791_v50 = vld [vmem:[%s4285_s7 + $0x1c8] sm:$0xff] }
 0x369   : > { %2011 = vmatpush1.msra.mxu0 %v1756_v48  ;;  %2088 = vmatpush1.msra.mxu1 %v1820_v51  ;;  %v1855_v48 = vld [vmem:[%s4285_s7 + $0x3c8] sm:$0xff]  ;;  %v1790_v51 = vld [vmem:[%s4285_s7 + $0x1c0] sm:$0xff] }
 0x36a   : > { %2012 = vmatprep.subr.mxu0 %v1755_v52  ;;  %2089 = vmatprep.subr.mxu1 %v1819_v54  ;;  %v1854_v52 = vld [vmem:[%s4285_s7 + $0x3c0] sm:$0xff]  ;;  %v1789_v54 = vld [vmem:[%s4285_s7 + $0x1b8] sm:$0xff] }
 0x36b   : > { %2013 = vmatpush1.msra.mxu0 %v1754_v58  ;;  %2090 = vmatpush1.msra.mxu1 %v1818_v53  ;;  %v1853_v58 = vld [vmem:[%s4285_s7 + $0x3b8] sm:$0xff]  ;;  %v1788_v53 = vld [vmem:[%s4285_s7 + $0x1b0] sm:$0xff] }
 0x36c   : > { %2014 = vmatprep.subr.mxu0 %v1753_v44  ;;  %2091 = vmatprep.subr.mxu1 %v1817_v1  ;;  %v1852_v44 = vld [vmem:[%s4285_s7 + $0x3b0] sm:$0xff]  ;;  %v1787_v1 = vld [vmem:[%s4285_s7 + $0x1a8] sm:$0xff] }
 0x36d   : > { %2015 = vmatpush1.msra.mxu0 %v1752_v2  ;;  %2092 = vmatpush1.msra.mxu1 %v1816_v3  ;;  %v1851_v2 = vld [vmem:[%s4285_s7 + $0x3a8] sm:$0xff]  ;;  %v1786_v3 = vld [vmem:[%s4285_s7 + $0x1a0] sm:$0xff] }
 0x36e   : > { %2016 = vmatprep.subr.mxu0 %v1751_v4  ;;  %2093 = vmatprep.subr.mxu1 %v1815_v5  ;;  %v1850_v4 = vld [vmem:[%s4285_s7 + $0x3a0] sm:$0xff]  ;;  %v1785_v5 = vld [vmem:[%s4285_s7 + $0x198] sm:$0xff] }
 0x36f   : > { %2017 = vmatpush1.msra.mxu0 %v1750_v6  ;;  %2094 = vmatpush1.msra.mxu1 %v1814_v7  ;;  %v1849_v6 = vld [vmem:[%s4285_s7 + $0x398] sm:$0xff]  ;;  %v1784_v7 = vld [vmem:[%s4285_s7 + $0x190] sm:$0xff] }
 0x370   : > { %2018 = vmatprep.subr.mxu0 %v1749_v8  ;;  %2095 = vmatprep.subr.mxu1 %v1813_v26  ;;  %v1848_v8 = vld [vmem:[%s4285_s7 + $0x390] sm:$0xff]  ;;  %v1783_v26 = vld [vmem:[%s4285_s7 + $0x188] sm:$0xff] }
 0x371   : > { %2019 = vmatpush1.msra.mxu0 %v1748_v11  ;;  %2096 = vmatpush1.msra.mxu1 %v1812_v27  ;;  %v1847_v11 = vld [vmem:[%s4285_s7 + $0x388] sm:$0xff]  ;;  %v1782_v27 = vld [vmem:[%s4285_s7 + $0x180] sm:$0xff] }
 0x372   : > { %2020 = vmatprep.subr.mxu0 %v1747_v9  ;;  %2097 = vmatprep.subr.mxu1 %v1811_v12  ;;  %v1846_v9 = vld [vmem:[%s4285_s7 + $0x380] sm:$0xff]  ;;  %v1781_v12 = vld [vmem:[%s4285_s7 + $0x178] sm:$0xff] }
 0x373   : > { %2021 = vmatpush1.msra.mxu0 %v1746_v13  ;;  %2098 = vmatpush1.msra.mxu1 %v1810_v14  ;;  %v1845_v13 = vld [vmem:[%s4285_s7 + $0x378] sm:$0xff]  ;;  %v1780_v14 = vld [vmem:[%s4285_s7 + $0x170] sm:$0xff] }
 0x374   : > { %2022 = vmatprep.subr.mxu0 %v1745_v16  ;;  %2099 = vmatprep.subr.mxu1 %v1809_v17  ;;  %v1844_v16 = vld [vmem:[%s4285_s7 + $0x370] sm:$0xff]  ;;  %v1779_v17 = vld [vmem:[%s4285_s7 + $0x168] sm:$0xff] }
 0x375   : > { %2023 = vmatpush1.msra.mxu0 %v1744_v18  ;;  %2100 = vmatpush1.msra.mxu1 %v1808_v19  ;;  %v1843_v18 = vld [vmem:[%s4285_s7 + $0x368] sm:$0xff]  ;;  %v1778_v19 = vld [vmem:[%s4285_s7 + $0x160] sm:$0xff] }
 0x376   : > { %2024 = vmatprep.subr.mxu0 %v1743_v22  ;;  %2101 = vmatprep.subr.mxu1 %v1807_v61  ;;  %v1842_v22 = vld [vmem:[%s4285_s7 + $0x360] sm:$0xff]  ;;  %v1777_v61 = vld [vmem:[%s4285_s7 + $0x158] sm:$0xff] }
 0x377   : > { %2025 = vmatpush1.msra.mxu0 %v1742_v62  ;;  %2102 = vmatpush1.msra.mxu1 %v1806_v24  ;;  %v1841_v62 = vld [vmem:[%s4285_s7 + $0x358] sm:$0xff]  ;;  %v1776_v24 = vld [vmem:[%s4285_s7 + $0x150] sm:$0xff] }
 0x378   : > { %2026 = vmatprep.subr.mxu0 %v1741_v25  ;;  %2103 = vmatprep.subr.mxu1 %v1805_v28  ;;  %v1840_v25 = vld [vmem:[%s4285_s7 + $0x350] sm:$0xff]  ;;  %v1775_v28 = vld [vmem:[%s4285_s7 + $0x148] sm:$0xff] }
 0x379   : > { %2027 = vmatpush1.msra.mxu0 %v1740_v10  ;;  %2104 = vmatpush1.msra.mxu1 %v1804_v29  ;;  %v1839_v10 = vld [vmem:[%s4285_s7 + $0x348] sm:$0xff]  ;;  %v1774_v29 = vld [vmem:[%s4285_s7 + $0x140] sm:$0xff] }
 0x37a   : > { %2028 = vmatprep.subr.mxu0 %v1739_v15  ;;  %2105 = vmatprep.subr.mxu1 %v1803_v30  ;;  %v1838_v15 = vld [vmem:[%s4285_s7 + $0x340] sm:$0xff]  ;;  %v1773_v30 = vld [vmem:[%s4285_s7 + $0x138] sm:$0xff] }
 0x37b   : > { %2029 = vmatpush1.msra.mxu0 %v1738_v63  ;;  %2106 = vmatpush1.msra.mxu1 %v1802_v0  ;;  %v1837_v63 = vld [vmem:[%s4285_s7 + $0x338] sm:$0xff]  ;;  %v1772_v0 = vld [vmem:[%s4285_s7 + $0x130] sm:$0xff] }
 0x37c   : > { %2030 = vmatprep.subr.mxu0 %v1737_v32  ;;  %2107 = vmatprep.subr.mxu1 %v1801_v33  ;;  %v1836_v32 = vld [vmem:[%s4285_s7 + $0x330] sm:$0xff]  ;;  %v1771_v33 = vld [vmem:[%s4285_s7 + $0x128] sm:$0xff] }
 0x37d   : > { %2031 = vmatpush1.msra.mxu0 %v1736_v34  ;;  %2108 = vmatpush1.msra.mxu1 %v1800_v20  ;;  %v1835_v34 = vld [vmem:[%s4285_s7 + $0x328] sm:$0xff]  ;;  %v1770_v20 = vld [vmem:[%s4285_s7 + $0x120] sm:$0xff] }
 0x37e   : > { %2032 = vmatprep.subr.mxu0 %v1735_v23  ;;  %2109 = vmatprep.subr.mxu1 %v1799_v36  ;;  %v1834_v23 = vld [vmem:[%s4285_s7 + $0x320] sm:$0xff]  ;;  %v1769_v36 = vld [vmem:[%s4285_s7 + $0x118] sm:$0xff] }
 0x37f   : > { %2033 = vmatpush1.msra.mxu0 %v1734_v35  ;;  %2110 = vmatpush1.msra.mxu1 %v1798_v38  ;;  %v1833_v35 = vld [vmem:[%s4285_s7 + $0x318] sm:$0xff]  ;;  %v1768_v38 = vld [vmem:[%s4285_s7 + $0x110] sm:$0xff] }
 0x380   : > { %2034 = vmatprep.subr.mxu0 %v1797_v39  ;;  %2111 = vmatprep.subr.mxu1 %v1861_v40  ;;  %v1832_v39 = vld [vmem:[%s4285_s7 + $0x310] sm:$0xff]  ;;  %v1767_v40 = vld [vmem:[%s4285_s7 + $0x108] sm:$0xff] }
 0x381   : > { %2035 = vmatpush2.msra.mxu0 %v1796_v37  ;;  %2112 = vmatpush2.msra.mxu1 %v1860_v41  ;;  %v1831_v37 = vld [vmem:[%s4285_s7 + $0x308] sm:$0xff]  ;;  %v1766_v41 = vld [vmem:[%s4285_s7 + $0x100] sm:$0xff] }
 0x382   : > { %2036 = vmatprep.subr.mxu0 %v1795_v42  ;;  %2113 = vmatprep.subr.mxu1 %v1859_v45  ;;  %v1830_v42 = vld [vmem:[%s4285_s7 + $0x300] sm:$0xff]  ;;  %v1893_v45 = vld [vmem:[%s4285_s7 + $0x4f8] sm:$0xff] }
 0x383   : > { %2037 = vmatpush2.msra.mxu0 %v1794_v43  ;;  %2114 = vmatpush2.msra.mxu1 %v1858_v46  ;;  %v1957_v43 = vld [vmem:[%s4285_s7 + $0x6f8] sm:$0xff]  ;;  %v3853_v46 = vld [vmem:[%s4284_s6] sm:$0xff] }
 0x384   : > { %2038 = vmatprep.subr.mxu0 %v1793_v31  ;;  %2115 = vmatprep.subr.mxu1 %v1857_v47  ;;  %v1366_v31 = vrot.slane %v3853_v46, %v3059_v56  ;;  %v1374_v47 = vrot.slane %v3853_v46, %v402_v57  ;;  %v1892_v57 = vld [vmem:[%s4285_s7 + $0x4f0] sm:$0xff] }
 0x385   : > { %2039 = vmatpush2.msra.mxu0 %v1792_v21  ;;  %2116 = vmatpush2.msra.mxu1 %v1856_v49  ;;  %v1370_v21 = vrot.slane %v3853_v46, %v3066_v59  ;;  %v1378_v49 = vrot.slane %v3853_v46, %v406_v60  ;;  %v1956_v60 = vld [vmem:[%s4285_s7 + $0x6f0] sm:$0xff] }
 0x386   : > { %2040 = vmatprep.subr.mxu0 %v1791_v50  ;;  %2117 = vmatprep.subr.mxu1 %v1855_v48 }
 0x387   : > { %2041 = vmatpush2.msra.mxu0 %v1790_v51  ;;  %2118 = vmatpush2.msra.mxu1 %v1854_v52 }
 0x388   : > { %2042 = vmatprep.subr.mxu0 %v1789_v54  ;;  %2119 = vmatprep.subr.mxu1 %v1853_v58 }
 0x389   : > { %2043 = vmatpush2.msra.mxu0 %v1788_v53  ;;  %2120 = vmatpush2.msra.mxu1 %v1852_v44 }
 0x38a   : > { %2044 = vmatprep.subr.mxu0 %v1787_v1  ;;  %2121 = vmatprep.subr.mxu1 %v1851_v2 }
 0x38b   : > { %2045 = vmatpush2.msra.mxu0 %v1786_v3  ;;  %2122 = vmatpush2.msra.mxu1 %v1850_v4 }
 0x38c   : > { %2046 = vmatprep.subr.mxu0 %v1785_v5  ;;  %2123 = vmatprep.subr.mxu1 %v1849_v6  ;;  %v1891_v5 = vld [vmem:[%s4285_s7 + $0x4e8] sm:$0xff] }
 0x38d   : > { %2047 = vmatpush2.msra.mxu0 %v1784_v7  ;;  %2124 = vmatpush2.msra.mxu1 %v1848_v8  ;;  %v1955_v6 = vld [vmem:[%s4285_s7 + $0x6e8] sm:$0xff]  ;;  %v1890_v7 = vld [vmem:[%s4285_s7 + $0x4e0] sm:$0xff] }
 0x38e   : > { %2048 = vmatprep.subr.mxu0 %v1783_v26  ;;  %2125 = vmatprep.subr.mxu1 %v1847_v11  ;;  %v1954_v8 = vld [vmem:[%s4285_s7 + $0x6e0] sm:$0xff]  ;;  %v1889_v26 = vld [vmem:[%s4285_s7 + $0x4d8] sm:$0xff] }
 0x38f   : > { %2049 = vmatpush2.msra.mxu0 %v1782_v27  ;;  %2126 = vmatpush2.msra.mxu1 %v1846_v9  ;;  %v1953_v11 = vld [vmem:[%s4285_s7 + $0x6d8] sm:$0xff]  ;;  %v1888_v27 = vld [vmem:[%s4285_s7 + $0x4d0] sm:$0xff] }
 0x390   : > { %2050 = vmatprep.subr.mxu0 %v1781_v12  ;;  %2127 = vmatprep.subr.mxu1 %v1845_v13  ;;  %v1952_v9 = vld [vmem:[%s4285_s7 + $0x6d0] sm:$0xff]  ;;  %v1887_v12 = vld [vmem:[%s4285_s7 + $0x4c8] sm:$0xff] }
 0x391   : > { %2051 = vmatpush2.msra.mxu0 %v1780_v14  ;;  %2128 = vmatpush2.msra.mxu1 %v1844_v16  ;;  %v1951_v13 = vld [vmem:[%s4285_s7 + $0x6c8] sm:$0xff]  ;;  %v1886_v14 = vld [vmem:[%s4285_s7 + $0x4c0] sm:$0xff] }
 0x392   : > { %2052 = vmatprep.subr.mxu0 %v1779_v17  ;;  %2129 = vmatprep.subr.mxu1 %v1843_v18  ;;  %v1950_v16 = vld [vmem:[%s4285_s7 + $0x6c0] sm:$0xff] }
 0x393   : > { %2053 = vmatpush2.msra.mxu0 %v1778_v19  ;;  %2130 = vmatpush2.msra.mxu1 %v1842_v22  ;;  %v1885_v19 = vld [vmem:[%s4285_s7 + $0x4b8] sm:$0xff] }
 0x394   : > { %2054 = vmatprep.subr.mxu0 %v1777_v61  ;;  %2131 = vmatprep.subr.mxu1 %v1841_v62  ;;  %v1949_v22 = vld [vmem:[%s4285_s7 + $0x6b8] sm:$0xff]  ;;  %v1884_v61 = vld [vmem:[%s4285_s7 + $0x4b0] sm:$0xff] }
 0x395   : > { %2055 = vmatpush2.msra.mxu0 %v1776_v24  ;;  %2132 = vmatpush2.msra.mxu1 %v1840_v25  ;;  %v1948_v62 = vld [vmem:[%s4285_s7 + $0x6b0] sm:$0xff]  ;;  %v1385_v24 = vsub.s32 5, %v3056_v55  ;;  %v1393_v25 = vsub.s32 7, %v3056_v55 }
 0x396   : > { %2056 = vmatprep.subr.mxu0 %v1775_v28  ;;  %2133 = vmatprep.subr.mxu1 %v1839_v10 }
 0x397   : > { %2057 = vmatpush2.msra.mxu0 %v1774_v29  ;;  %2134 = vmatpush2.msra.mxu1 %v1838_v15  ;;  %v1883_v15 = vld [vmem:[%s4285_s7 + $0x4a8] sm:$0xff] }
 0x398   : > { %2058 = vmatprep.subr.mxu0 %v1773_v30  ;;  %2135 = vmatprep.subr.mxu1 %v1837_v63  ;;  %v1947_v30 = vld [vmem:[%s4285_s7 + $0x6a8] sm:$0xff] }
 0x399   : > { %2059 = vmatpush2.msra.mxu0 %v1772_v0  ;;  %2136 = vmatpush2.msra.mxu1 %v1836_v32 }
 0x39a   : > { %2060 = vmatprep.subr.mxu0 %v1771_v33  ;;  %2137 = vmatprep.subr.mxu1 %v1835_v34  ;;  %v1882_v33 = vld [vmem:[%s4285_s7 + $0x4a0] sm:$0xff] }
 0x39b   : > { %2061 = vmatpush2.msra.mxu0 %v1770_v20  ;;  %2138 = vmatpush2.msra.mxu1 %v1834_v23  ;;  %v1946_v34 = vld [vmem:[%s4285_s7 + $0x6a0] sm:$0xff] }
 0x39c   : > { %2062 = vmatprep.subr.mxu0 %v1769_v36  ;;  %2139 = vmatprep.subr.mxu1 %v1833_v35  ;;  %v3934_v36 = vrot.slane %v3853_v46, %v1385_v24  ;;  %v3937_v35 = vrot.slane %v3853_v46, %v1393_v25  ;;  %v1864_v24 = vld [vmem:[%s4285_s7 + $0x410] sm:$0xff] }
 0x39d   : > { %2063 = vmatpush2.msra.mxu0 %v1768_v38  ;;  %2140 = vmatpush2.msra.mxu1 %v1832_v39  ;;  %v1881_v38 = vld [vmem:[%s4285_s7 + $0x498] sm:$0xff]  ;;  %v1928_v25 = vld [vmem:[%s4285_s7 + $0x610] sm:$0xff] }
 0x39e   : > { %2064 = vmatprep.subr.mxu0 %v1767_v40  ;;  %2141 = vmatprep.subr.mxu1 %v1831_v37  ;;  %v1945_v39 = vld [vmem:[%s4285_s7 + $0x698] sm:$0xff] }
 0x39f   : > { %2065 = vmatpush2.msra.mxu0 %v1766_v41  ;;  %2142 = vmatpush2.msra.mxu1 %v1830_v42 }
 0x3a0   : > { %2156 = vmatprep.subr.mxu0 %v1893_v45  ;;  %2233 = vmatprep.subr.mxu1 %v1957_v43  ;;  %v1880_v45 = vld [vmem:[%s4285_s7 + $0x490] sm:$0xff] }
 0x3a1   : > { %v1944_v43 = vld [vmem:[%s4285_s7 + $0x690] sm:$0xff] }
 0x40a   : > { %v1476_v50 = vpop.f32.mrf.mxu0  ;;  %v1553_v48 = vpop.f32.mrf.mxu1 }
 0x40b   : > { %v1477_v51 = vadd.f32 %v1476_v50, %v1366_v31  ;;  %v1554_v52 = vadd.f32 %v1553_v48, %v1374_v47 }
 0x40c   : > { %v1478_v54 = vpop.f32.mrf.mxu0  ;;  %v1555_v58 = vpop.f32.mrf.mxu1 }
 0x40d   : > { %v1479_v53 = vadd.f32 %v1478_v54, %v1370_v21  ;;  %v1556_v44 = vadd.f32 %v1555_v58, %v1378_v49  ;;  %v1718_v3 = vmax.f32 %v1477_v51, 0.0  ;;  %v1720_v4 = vmax.f32 %v1554_v52, 0.0  ;;  %v1878_v51 = vld [vmem:[%s4285_s7 + $0x480] sm:$0xff]  ;;  %v1877_v54 = vld [vmem:[%s4285_s7 + $0x478] sm:$0xff] }
 0x40e   : > { %v1942_v52 = vld [vmem:[%s4285_s7 + $0x680] sm:$0xff] }
 0x40f   : > { %v1719_v1 = vmax.f32 %v1479_v53, 0.0  ;;  %v1721_v2 = vmax.f32 %v1556_v44, 0.0  ;;  %v1941_v44 = vld [vmem:[%s4285_s7 + $0x678] sm:$0xff] }
 0x411   : > { %2066 = vmatprep.mubr.f32.mxu0 %v1719_v1  ;;  %2143 = vmatprep.mubr.f32.mxu1 %v1721_v2  ;;  %v1876_v1 = vld [vmem:[%s4285_s7 + $0x470] sm:$0xff] }
 0x412   : > { %2067 = vmatmul.mubr.f32.vlgmr.msra.gmra.mxu0 %v1718_v3  ;;  %2144 = vmatmul.mubr.f32.vlgmr.msra.gmra.mxu1 %v1720_v4  ;;  %v1940_v2 = vld [vmem:[%s4285_s7 + $0x670] sm:$0xff]  ;;  %v1875_v3 = vld [vmem:[%s4285_s7 + $0x468] sm:$0xff] }
 0x413   : > { %2157 = vmatpush1.msra.mxu0 %v1892_v57  ;;  %2234 = vmatpush1.msra.mxu1 %v1956_v60  ;;  %v1939_v4 = vld [vmem:[%s4285_s7 + $0x668] sm:$0xff]  ;;  %v1874_v57 = vld [vmem:[%s4285_s7 + $0x460] sm:$0xff] }
 0x414   : > { %2158 = vmatprep.subr.mxu0 %v1891_v5  ;;  %2235 = vmatprep.subr.mxu1 %v1955_v6  ;;  %v1938_v60 = vld [vmem:[%s4285_s7 + $0x660] sm:$0xff]  ;;  %v1873_v5 = vld [vmem:[%s4285_s7 + $0x458] sm:$0xff] }
 0x415   : > { %2159 = vmatpush1.msra.mxu0 %v1890_v7  ;;  %2236 = vmatpush1.msra.mxu1 %v1954_v8  ;;  %v1937_v6 = vld [vmem:[%s4285_s7 + $0x658] sm:$0xff]  ;;  %v1872_v7 = vld [vmem:[%s4285_s7 + $0x450] sm:$0xff] }
 0x416   : > { %2160 = vmatprep.subr.mxu0 %v1889_v26  ;;  %2237 = vmatprep.subr.mxu1 %v1953_v11  ;;  %v1936_v8 = vld [vmem:[%s4285_s7 + $0x650] sm:$0xff]  ;;  %v1871_v26 = vld [vmem:[%s4285_s7 + $0x448] sm:$0xff] }
 0x417   : > { %v1482_v17 = vpop.f32.mrf.mxu0  ;;  %v1559_v18 = vpop.f32.mrf.mxu1  ;;  %2161 = vmatpush1.msra.mxu0 %v1888_v27  ;;  %2238 = vmatpush1.msra.mxu1 %v1952_v9  ;;  %v1935_v11 = vld [vmem:[%s4285_s7 + $0x648] sm:$0xff]  ;;  %v1870_v27 = vld [vmem:[%s4285_s7 + $0x440] sm:$0xff] }
 0x418   : > { %2162 = vmatprep.subr.mxu0 %v1887_v12  ;;  %2239 = vmatprep.subr.mxu1 %v1951_v13  ;;  %v1483_v28 = vadd.f32 %v1482_v17, %v1366_v31  ;;  %v1560_v63 = vadd.f32 %v1559_v18, %v1374_v47  ;;  %v1934_v9 = vld [vmem:[%s4285_s7 + $0x640] sm:$0xff]  ;;  %v1869_v12 = vld [vmem:[%s4285_s7 + $0x438] sm:$0xff]  ;;  %v1867_v17 = vld [vmem:[%s4285_s7 + $0x428] sm:$0xff] }
 0x419   : > { %v1484_v10 = vpop.f32.mrf.mxu0  ;;  %v1561_v29 = vpop.f32.mrf.mxu1  ;;  %2163 = vmatpush1.msra.mxu0 %v1886_v14  ;;  %2240 = vmatpush1.msra.mxu1 %v1950_v16  ;;  %v1933_v13 = vld [vmem:[%s4285_s7 + $0x638] sm:$0xff]  ;;  %v1868_v14 = vld [vmem:[%s4285_s7 + $0x430] sm:$0xff]  ;;  %v1931_v18 = vld [vmem:[%s4285_s7 + $0x628] sm:$0xff] }
 0x41a   : > { %v1485_v0 = vadd.f32 %v1484_v10, %v1370_v21  ;;  %v1562_v32 = vadd.f32 %v1561_v29, %v1378_v49  ;;  %2164 = vmatprep.subr.mxu0 %v1885_v19  ;;  %2241 = vmatprep.subr.mxu1 %v1949_v22  ;;  %v1726_v41 = vmax.f32 %v1483_v28, 0.0  ;;  %v1728_v42 = vmax.f32 %v1560_v63, 0.0  ;;  %v1879_v21 = vld [vmem:[%s4285_s7 + $0x488] sm:$0xff]  ;;  %v1932_v16 = vld [vmem:[%s4285_s7 + $0x630] sm:$0xff]  ;;  %v1866_v19 = vld [vmem:[%s4285_s7 + $0x420] sm:$0xff] }
 0x41b   : > { %2165 = vmatpush1.msra.mxu0 %v1884_v61  ;;  %2242 = vmatpush1.msra.mxu1 %v1948_v62  ;;  %v1943_v49 = vld [vmem:[%s4285_s7 + $0x688] sm:$0xff]  ;;  %v1930_v22 = vld [vmem:[%s4285_s7 + $0x620] sm:$0xff]  ;;  %v1865_v61 = vld [vmem:[%s4285_s7 + $0x418] sm:$0xff] }
 0x41c   : > { %v1727_v20 = vmax.f32 %v1485_v0, 0.0  ;;  %v1729_v23 = vmax.f32 %v1562_v32, 0.0  ;;  %2166 = vmatprep.subr.mxu0 %v1883_v15  ;;  %2243 = vmatprep.subr.mxu1 %v1947_v30  ;;  %v1929_v62 = vld [vmem:[%s4285_s7 + $0x618] sm:$0xff]  ;;  %v1863_v28 = vld [vmem:[%s4285_s7 + $0x408] sm:$0xff]  ;;  %v1862_v29 = vld [vmem:[%s4285_s7 + $0x400] sm:$0xff] }
 0x41d   : > { %v3945_v40 = vpop.f32.mrf.mxu0  ;;  %v3947_v37 = vpop.f32.mrf.mxu1  ;;  %2167 = vmatpush1.msra.mxu0 %v1882_v33  ;;  %2244 = vmatpush1.msra.mxu1 %v1946_v34  ;;  %v1927_v10 = vld [vmem:[%s4285_s7 + $0x608] sm:$0xff]  ;;  %v1926_v15 = vld [vmem:[%s4285_s7 + $0x600] sm:$0xff]  ;;  %v1925_v30 = vld [vmem:[%s4285_s7 + $0x5f8] sm:$0xff] }
 0x41e   : > { %2072 = vmatprep.mubr.f32.mxu0 %v1727_v20  ;;  %2149 = vmatprep.mubr.f32.mxu1 %v1729_v23  ;;  %v1989_v63 = vld [vmem:[%s4285_s7 + $0x7f8] sm:$0xff]  ;;  %v1924_v0 = vld [vmem:[%s4285_s7 + $0x5f0] sm:$0xff]  ;;  %v1923_v33 = vld [vmem:[%s4285_s7 + $0x5e8] sm:$0xff] }
 0x41f   : > { %v1632_v31 = vpop.f32.mrf.mxu0  ;;  %v1709_v47 = vpop.f32.mrf.mxu1  ;;  %2168 = vmatprep.subr.mxu0 %v1881_v38  ;;  %2245 = vmatprep.subr.mxu1 %v1945_v39  ;;  %v1988_v32 = vld [vmem:[%s4285_s7 + $0x7f0] sm:$0xff]  ;;  %v1987_v34 = vld [vmem:[%s4285_s7 + $0x7e8] sm:$0xff]  ;;  %v1922_v20 = vld [vmem:[%s4285_s7 + $0x5e0] sm:$0xff] }
 0x420   : > { %v1633_v50 = vadd.f32 %v1632_v31, %v3934_v36  ;;  %v1710_v48 = vadd.f32 %v1709_v47, %v3937_v35  ;;  %2073 = vmatmul.mubr.f32.gmra.mxu0 %v1726_v41  ;;  %2150 = vmatmul.mubr.f32.gmra.mxu1 %v1728_v42  ;;  %v1986_v23 = vld [vmem:[%s4285_s7 + $0x7e0] sm:$0xff]  ;;  %v1921_v38 = vld [vmem:[%s4285_s7 + $0x5d8] sm:$0xff]  ;;  %v1920_v41 = vld [vmem:[%s4285_s7 + $0x5d0] sm:$0xff] }
 0x421   : > { %2169 = vmatpush1.msra.mxu0 %v1880_v45  ;;  %2246 = vmatpush1.msra.mxu1 %v1944_v43  ;;  %v1985_v39 = vld [vmem:[%s4285_s7 + $0x7d8] sm:$0xff]  ;;  %v1984_v42 = vld [vmem:[%s4285_s7 + $0x7d0] sm:$0xff]  ;;  %v1919_v45 = vld [vmem:[%s4285_s7 + $0x5c8] sm:$0xff] }
 0x422   : > { %v1723_v58 = vmax.f32 %v1633_v50, 0.0  ;;  %v1725_v53 = vmax.f32 %v1710_v48, 0.0  ;;  %2170 = vmatprep.subr.mxu0 %v1879_v21  ;;  %2247 = vmatprep.subr.mxu1 %v1943_v49  ;;  %v1983_v43 = vld [vmem:[%s4285_s7 + $0x7c8] sm:$0xff]  ;;  %v1918_v31 = vld [vmem:[%s4285_s7 + $0x5c0] sm:$0xff]  ;;  %v1917_v21 = vld [vmem:[%s4285_s7 + $0x5b8] sm:$0xff] }
 0x423   : > { %2171 = vmatpush1.msra.mxu0 %v1878_v51  ;;  %2248 = vmatpush1.msra.mxu1 %v1942_v52  ;;  %v1982_v47 = vld [vmem:[%s4285_s7 + $0x7c0] sm:$0xff]  ;;  %v1981_v49 = vld [vmem:[%s4285_s7 + $0x7b8] sm:$0xff]  ;;  %v1916_v50 = vld [vmem:[%s4285_s7 + $0x5b0] sm:$0xff] }
 0x424   : > { %2172 = vmatprep.subr.mxu0 %v1877_v54  ;;  %2220 = vmatprep.mubr.f32.mxu0 %v1723_v58  ;;  %v1980_v48 = vld [vmem:[%s4285_s7 + $0x7b0] sm:$0xff]  ;;  %v1915_v51 = vld [vmem:[%s4285_s7 + $0x5a8] sm:$0xff]  ;;  %v1914_v54 = vld [vmem:[%s4285_s7 + $0x5a0] sm:$0xff] }
 0x425   : > { %2249 = vmatprep.subr.mxu1 %v1941_v44  ;;  %2297 = vmatprep.mubr.f32.mxu1 %v1725_v53  ;;  %v1979_v52 = vld [vmem:[%s4285_s7 + $0x7a8] sm:$0xff]  ;;  %v1978_v58 = vld [vmem:[%s4285_s7 + $0x7a0] sm:$0xff]  ;;  %v1913_v53 = vld [vmem:[%s4285_s7 + $0x598] sm:$0xff] }
 0x426   : > { %2173 = vmatpush1.msra.mxu0 %v1876_v1  ;;  %2250 = vmatpush1.msra.mxu1 %v1940_v2  ;;  %v1977_v44 = vld [vmem:[%s4285_s7 + $0x798] sm:$0xff]  ;;  %v1912_v1 = vld [vmem:[%s4285_s7 + $0x590] sm:$0xff] }
 0x427   : > { %2174 = vmatprep.subr.mxu0 %v1875_v3  ;;  %2251 = vmatprep.subr.mxu1 %v1939_v4  ;;  %v1976_v2 = vld [vmem:[%s4285_s7 + $0x790] sm:$0xff]  ;;  %v1911_v3 = vld [vmem:[%s4285_s7 + $0x588] sm:$0xff] }
 0x428   : > { %2175 = vmatpush1.msra.mxu0 %v1874_v57  ;;  %2252 = vmatpush1.msra.mxu1 %v1938_v60  ;;  %v1975_v4 = vld [vmem:[%s4285_s7 + $0x788] sm:$0xff]  ;;  %v1910_v57 = vld [vmem:[%s4285_s7 + $0x580] sm:$0xff] }
 0x429   : > { %2176 = vmatprep.subr.mxu0 %v1873_v5  ;;  %2253 = vmatprep.subr.mxu1 %v1937_v6  ;;  %v1974_v60 = vld [vmem:[%s4285_s7 + $0x780] sm:$0xff]  ;;  %v1909_v5 = vld [vmem:[%s4285_s7 + $0x578] sm:$0xff] }
 0x42a   : > { %2177 = vmatpush1.msra.mxu0 %v1872_v7  ;;  %2254 = vmatpush1.msra.mxu1 %v1936_v8  ;;  %v1973_v6 = vld [vmem:[%s4285_s7 + $0x778] sm:$0xff]  ;;  %v1908_v7 = vld [vmem:[%s4285_s7 + $0x570] sm:$0xff] }
 0x42b   : > { %2178 = vmatprep.subr.mxu0 %v1871_v26  ;;  %2255 = vmatprep.subr.mxu1 %v1935_v11  ;;  %v1972_v8 = vld [vmem:[%s4285_s7 + $0x770] sm:$0xff]  ;;  %v1907_v26 = vld [vmem:[%s4285_s7 + $0x568] sm:$0xff] }
 0x42c   : > { %2179 = vmatpush1.msra.mxu0 %v1870_v27  ;;  %2256 = vmatpush1.msra.mxu1 %v1934_v9  ;;  %v1971_v11 = vld [vmem:[%s4285_s7 + $0x768] sm:$0xff]  ;;  %v1906_v27 = vld [vmem:[%s4285_s7 + $0x560] sm:$0xff] }
 0x42d   : > { %2180 = vmatprep.subr.mxu0 %v1869_v12  ;;  %2257 = vmatprep.subr.mxu1 %v1933_v13  ;;  %v1970_v9 = vld [vmem:[%s4285_s7 + $0x760] sm:$0xff]  ;;  %v1905_v12 = vld [vmem:[%s4285_s7 + $0x558] sm:$0xff] }
 0x42e   : > { %2181 = vmatpush1.msra.mxu0 %v1868_v14  ;;  %2258 = vmatpush1.msra.mxu1 %v1932_v16  ;;  %v1969_v13 = vld [vmem:[%s4285_s7 + $0x758] sm:$0xff]  ;;  %v1381_v14 = vsub.s32 4, %v3056_v55  ;;  %v1389_v16 = vsub.s32 6, %v3056_v55  ;;  %v1967_v55 = vld [vmem:[%s4285_s7 + $0x748] sm:$0xff] }
 0x42f   : > { %2182 = vmatprep.subr.mxu0 %v1867_v17  ;;  %2259 = vmatprep.subr.mxu1 %v1931_v18  ;;  %v1904_v17 = vld [vmem:[%s4285_s7 + $0x550] sm:$0xff] }
 0x430   : > { %2183 = vmatpush1.msra.mxu0 %v1866_v19  ;;  %2260 = vmatpush1.msra.mxu1 %v1930_v22  ;;  %v1968_v18 = vld [vmem:[%s4285_s7 + $0x750] sm:$0xff]  ;;  %v1903_v19 = vld [vmem:[%s4285_s7 + $0x548] sm:$0xff]  ;;  %v1636_v22 = vpop.f32.mrf.mxu0 }
 0x431   : > { %2184 = vmatprep.subr.mxu0 %v1865_v61  ;;  %2261 = vmatprep.subr.mxu1 %v1929_v62  ;;  %v1713_v61 = vpop.f32.mrf.mxu1  ;;  %v1902_v62 = vld [vmem:[%s4285_s7 + $0x540] sm:$0xff] }
 0x432   : > { %2185 = vmatpush1.msra.mxu0 %v1864_v24  ;;  %2262 = vmatpush1.msra.mxu1 %v1928_v25  ;;  %v1966_v24 = vld [vmem:[%s4285_s7 + $0x740] sm:$0xff]  ;;  %v1901_v25 = vld [vmem:[%s4285_s7 + $0x538] sm:$0xff] }
 0x433   : > { %2186 = vmatprep.subr.mxu0 %v1863_v28  ;;  %2263 = vmatprep.subr.mxu1 %v1927_v10  ;;  %v1965_v28 = vld [vmem:[%s4285_s7 + $0x738] sm:$0xff]  ;;  %v1382_v10 = vrot.slane %v3853_v46, %v1381_v14 }
 0x434   : > { %2187 = vmatpush1.msra.mxu0 %v1862_v29  ;;  %2264 = vmatpush1.msra.mxu1 %v1926_v15  ;;  %v1390_v29 = vrot.slane %v3853_v46, %v1389_v16  ;;  %v1900_v15 = vld [vmem:[%s4285_s7 + $0x530] sm:$0xff]  ;;  %v1963_v46 = vld [vmem:[%s4285_s7 + $0x728] sm:$0xff] }
 0x435   : > { %2188 = vmatprep.subr.mxu0 %v1925_v30  ;;  %2265 = vmatprep.subr.mxu1 %v1989_v63  ;;  %v1964_v30 = vld [vmem:[%s4285_s7 + $0x730] sm:$0xff]  ;;  %v1899_v63 = vld [vmem:[%s4285_s7 + $0x528] sm:$0xff] }
 0x436   : > { %2189 = vmatpush2.msra.mxu0 %v1924_v0  ;;  %2266 = vmatpush2.msra.mxu1 %v1988_v32  ;;  %v1638_v0 = vpop.f32.mrf.mxu0  ;;  %v1715_v32 = vpop.f32.mrf.mxu1 }
 0x437   : > { %2190 = vmatprep.subr.mxu0 %v1923_v33  ;;  %2267 = vmatprep.subr.mxu1 %v1987_v34  ;;  %v1898_v33 = vld [vmem:[%s4285_s7 + $0x520] sm:$0xff] }
 0x438   : > { %2191 = vmatpush2.msra.mxu0 %v1922_v20  ;;  %2268 = vmatpush2.msra.mxu1 %v1986_v23  ;;  %v1962_v34 = vld [vmem:[%s4285_s7 + $0x720] sm:$0xff]  ;;  %v1897_v20 = vld [vmem:[%s4285_s7 + $0x518] sm:$0xff] }
 0x439   : > { %2192 = vmatprep.subr.mxu0 %v1921_v38  ;;  %2269 = vmatprep.subr.mxu1 %v1985_v39  ;;  %v1961_v23 = vld [vmem:[%s4285_s7 + $0x718] sm:$0xff]  ;;  %v1631_v38 = vadd.f32 %v3945_v40, %v1382_v10  ;;  %v1708_v39 = vadd.f32 %v3947_v37, %v1390_v29  ;;  %v1895_v40 = vld [vmem:[%s4285_s7 + $0x508] sm:$0xff] }
 0x43a   : > { %2193 = vmatpush2.msra.mxu0 %v1920_v41  ;;  %2270 = vmatpush2.msra.mxu1 %v1984_v42  ;;  %v1896_v41 = vld [vmem:[%s4285_s7 + $0x510] sm:$0xff]  ;;  %v1959_v37 = vld [vmem:[%s4285_s7 + $0x708] sm:$0xff] }
 0x43b   : > { %2194 = vmatprep.subr.mxu0 %v1919_v45  ;;  %2271 = vmatprep.subr.mxu1 %v1983_v43  ;;  %v1960_v42 = vld [vmem:[%s4285_s7 + $0x710] sm:$0xff]  ;;  %v1639_v45 = vadd.f32 %v1638_v0, %v3934_v36  ;;  %v1716_v43 = vadd.f32 %v1715_v32, %v3937_v35  ;;  %v1958_v36 = vld [vmem:[%s4285_s7 + $0x700] sm:$0xff]  ;;  %v1722_v35 = vmax.f32 %v1631_v38, 0.0 }
 0x43c   : > { %2195 = vmatpush2.msra.mxu0 %v1918_v31  ;;  %2272 = vmatpush2.msra.mxu1 %v1982_v47  ;;  %v1894_v31 = vld [vmem:[%s4285_s7 + $0x500] sm:$0xff]  ;;  %v1724_v47 = vmax.f32 %v1708_v39, 0.0 }
 0x43d   : > { %2196 = vmatprep.subr.mxu0 %v1917_v21  ;;  %2273 = vmatprep.subr.mxu1 %v1981_v49  ;;  %v1637_v21 = vadd.f32 %v1636_v22, %v1382_v10  ;;  %v1714_v49 = vadd.f32 %v1713_v61, %v1390_v29 }
 0x43e   : > { %2197 = vmatpush2.msra.mxu0 %v1916_v50  ;;  %2274 = vmatpush2.msra.mxu1 %v1980_v48  ;;  %v1731_v50 = vmax.f32 %v1639_v45, 0.0  ;;  %v1733_v48 = vmax.f32 %v1716_v43, 0.0 }
 0x43f   : > { %2198 = vmatprep.subr.mxu0 %v1915_v51  ;;  %2275 = vmatprep.subr.mxu1 %v1979_v52  ;;  %v1730_v51 = vmax.f32 %v1637_v21, 0.0  ;;  %v1732_v52 = vmax.f32 %v1714_v49, 0.0 }
 0x440   : > { %2199 = vmatpush2.msra.mxu0 %v1914_v54  ;;  %2276 = vmatpush2.msra.mxu1 %v1978_v58  ;;  %v1990_v54 = vld [vmem:[%s4286_s8] sm:$0x3] }
 0x441   : > { %2200 = vmatprep.subr.mxu0 %v1913_v53  ;;  %2277 = vmatprep.subr.mxu1 %v1977_v44  ;;  %v1995_v44 = vrot.slane %v1990_v54, %v3059_v56 }
 0x442   : > { %2201 = vmatpush2.msra.mxu0 %v1912_v1  ;;  %2278 = vmatpush2.msra.mxu1 %v1976_v2 }
 0x443   : > { %2202 = vmatprep.subr.mxu0 %v1911_v3  ;;  %2279 = vmatprep.subr.mxu1 %v1975_v4  ;;  %v1999_v3 = vrot.slane %v1990_v54, %v3066_v59 }
 0x444   : > { %2203 = vmatpush2.msra.mxu0 %v1910_v57  ;;  %2280 = vmatpush2.msra.mxu1 %v1974_v60 }
 0x445   : > { %2204 = vmatprep.subr.mxu0 %v1909_v5  ;;  %2281 = vmatprep.subr.mxu1 %v1973_v6 }
 0x446   : > { %2205 = vmatpush2.msra.mxu0 %v1908_v7  ;;  %2282 = vmatpush2.msra.mxu1 %v1972_v8 }
 0x447   : > { %2206 = vmatprep.subr.mxu0 %v1907_v26  ;;  %2283 = vmatprep.subr.mxu1 %v1971_v11 }
 0x448   : > { %2207 = vmatpush2.msra.mxu0 %v1906_v27  ;;  %2284 = vmatpush2.msra.mxu1 %v1970_v9 }
 0x449   : > { %2208 = vmatprep.subr.mxu0 %v1905_v12  ;;  %2285 = vmatprep.subr.mxu1 %v1969_v13 }
 0x44a   : > { %2209 = vmatpush2.msra.mxu0 %v1904_v17  ;;  %2286 = vmatpush2.msra.mxu1 %v1968_v18 }
 0x44b   : > { %2210 = vmatprep.subr.mxu0 %v1903_v19  ;;  %2287 = vmatprep.subr.mxu1 %v1967_v55 }
 0x44c   : > { %2211 = vmatpush2.msra.mxu0 %v1902_v62  ;;  %2288 = vmatpush2.msra.mxu1 %v1966_v24 }
 0x44d   : > { %2212 = vmatprep.subr.mxu0 %v1901_v25  ;;  %2289 = vmatprep.subr.mxu1 %v1965_v28 }
 0x44e   : > { %2213 = vmatpush2.msra.mxu0 %v1900_v15  ;;  %2290 = vmatpush2.msra.mxu1 %v1964_v30 }
 0x44f   : > { %2214 = vmatprep.subr.mxu0 %v1899_v63  ;;  %2291 = vmatprep.subr.mxu1 %v1963_v46 }
 0x450   : > { %2215 = vmatpush2.msra.mxu0 %v1898_v33  ;;  %2292 = vmatpush2.msra.mxu1 %v1962_v34 }
 0x451   : > { %2216 = vmatprep.subr.mxu0 %v1897_v20  ;;  %2293 = vmatprep.subr.mxu1 %v1961_v23 }
 0x452   : > { %2217 = vmatpush2.msra.mxu0 %v1896_v41  ;;  %2294 = vmatpush2.msra.mxu1 %v1960_v42 }
 0x453   : > { %2218 = vmatprep.subr.mxu0 %v1895_v40  ;;  %2295 = vmatprep.subr.mxu1 %v1959_v37 }
 0x454   : > { %2219 = vmatpush2.msra.mxu0 %v1894_v31  ;;  %2296 = vmatpush2.msra.mxu1 %v1958_v36 }
 0x455   : > { %2221 = vmatmul.mubr.f32.vlgmr.msra.gmra.mxu0 %v1722_v35  ;;  %2298 = vmatmul.mubr.f32.vlgmr.msra.gmra.mxu1 %v1724_v47 }
 0x456   : > { %2226 = vmatprep.mubr.f32.mxu0 %v1731_v50  ;;  %2303 = vmatprep.mubr.f32.mxu1 %v1733_v48 }
 0x459   : > { %2227 = vmatmul.mubr.f32.gmra.mxu0 %v1730_v51  ;;  %2304 = vmatmul.mubr.f32.gmra.mxu1 %v1732_v52 }
 0x4d2   : > { %v2068_v58 = vpop.f32.mrf.mxu0  ;;  %v2145_v53 = vpop.f32.mrf.mxu1 }
 0x4d3   : > { %v2069_v60 = vadd.f32 %v2068_v58, %v1995_v44 }
 0x4d4   : > { %v2070_v1 = vpop.f32.mrf.mxu0  ;;  %v2147_v2 = vpop.f32.mrf.mxu1 }
 0x4d5   : > { %v2071_v5 = vadd.f32 %v2070_v1, %v1999_v3  ;;  %v2146_v8 = vadd.f32 %v2145_v53, %v2069_v60 }
 0x4d7   : > { %v2148_v9 = vadd.f32 %v2147_v2, %v2071_v5 }
 0x4e0   : > { %v2074_v4 = vpop.f32.mrf.mxu0  ;;  %v2151_v57 = vpop.f32.mrf.mxu1 }
 0x4e1   : > { %v2075_v26 = vadd.f32 %v2074_v4, %v1995_v44 }
 0x4e2   : > { %v2076_v6 = vpop.f32.mrf.mxu0  ;;  %v2153_v7 = vpop.f32.mrf.mxu1 }
 0x4e3   : > { %v2077_v12 = vadd.f32 %v2076_v6, %v1999_v3  ;;  %v2152_v56 = vadd.f32 %v2151_v57, %v2075_v26 }
 0x4e5   : > { %v2154_v55 = vadd.f32 %v2153_v7, %v2077_v12 }
 0x515   : > { %v2222_v11 = vpop.f32.mrf.mxu0  ;;  %v2299_v27 = vpop.f32.mrf.mxu1 }
 0x516   : > { %v2223_v13 = vadd.f32 %v2222_v11, %v2146_v8 }
 0x517   : > { %v2224_v14 = vpop.f32.mrf.mxu0  ;;  %v2301_v16 = vpop.f32.mrf.mxu1 }
 0x518   : > { %v2300_v17 = vadd.f32 %v2299_v27, %v2223_v13  ;;  %v2225_v18 = vadd.f32 %v2224_v14, %v2148_v9 }
 0x519   : > { %v2228_v19 = vpop.f32.mrf.mxu0  ;;  %v2305_v59 = vpop.f32.mrf.mxu1 }
 0x51a   : > { %v2310_v22 = vsub.f32 0.0, %v2300_v17  ;;  %v2302_v61 = vadd.f32 %v2301_v16, %v2225_v18  ;;  %v2229_v62 = vadd.f32 %v2228_v19, %v2152_v56 }
 0x51b   : > { %v2230_v24 = vpop.f32.mrf.mxu0  ;;  %v2307_v15 = vpop.f32.mrf.mxu1 }
 0x51c   : > { %v2314_v25 = vmul.f32 1.442695, %v2310_v22  ;;  %v2311_v28 = vsub.f32 0.0, %v2302_v61  ;;  %v2306_v10 = vadd.f32 %v2305_v59, %v2229_v62  ;;  %v2231_v29 = vadd.f32 %v2230_v24, %v2154_v55 }
 0x51e   : > { %2572 = vpow2.f32 %v2314_v25  ;;  %v2316_v30 = vmul.f32 1.442695, %v2311_v28  ;;  %v2312_v63 = vsub.f32 0.0, %v2306_v10  ;;  %v2308_v46 = vadd.f32 %v2307_v15, %v2231_v29 }
 0x520   : > { %2574 = vpow2.f32 %v2316_v30  ;;  %v2318_v0 = vmul.f32 1.442695, %v2312_v63  ;;  %v2313_v32 = vsub.f32 0.0, %v2308_v46 }
 0x522   : > { %2576 = vpow2.f32 %v2318_v0  ;;  %v2320_v33 = vmul.f32 1.442695, %v2313_v32 }
 0x524   : > { %2578 = vpow2.f32 %v2320_v33 }
 0x52b   : > { %v2573_v34 = vpop.eup %2572 }
 0x52c   : > { %v2322_v20 = vadd.f32 1.0, %v2573_v34 }
 0x52d   : > { %v2575_v23 = vpop.eup %2574 }
 0x52e   : > { %2580 = vrcp.f32 %v2322_v20  ;;  %v2323_v38 = vadd.f32 1.0, %v2575_v23 }
 0x52f   : > { %v2577_v39 = vpop.eup %2576 }
 0x530   : > { %2582 = vrcp.f32 %v2323_v38  ;;  %v2324_v41 = vadd.f32 1.0, %v2577_v39 }
 0x531   : > { %v2579_v42 = vpop.eup %2578 }
 0x532   : > { %2584 = vrcp.f32 %v2324_v41  ;;  %v2325_v45 = vadd.f32 1.0, %v2579_v42 }
 0x534   : > { %2586 = vrcp.f32 %v2325_v45 }
 0x53b   : > { %v2581_v43 = vpop.eup %2580 }
 0x53c   : > { %2330 = vst [vmem:[%s336_s28] sm:$0xff] %v2581_v43 }
 0x53d   : > { %v2583_v40 = vpop.eup %2582 }
 0x53e   : > { %2331 = vst [vmem:[%s336_s28 + $0x8] sm:$0xff] %v2583_v40 }
 0x53f   : > { %v2585_v37 = vpop.eup %2584 }
 0x540   : > { %2332 = vst [vmem:[%s336_s28 + $0x10] sm:$0xff] %v2585_v37 }
 0x541   : > { %v2587_v31 = vpop.eup %2586 }
 0x542   : > { %2333 = vst [vmem:[%s336_s28 + $0x18] sm:$0xff] %v2587_v31 }
 0x543 PF: > { %s19_s30 = sadd.s32 1, %s2594_s30  }
 0x544   : > { %p16_p5 = scmp.ge.s32.totalorder %s19_s30, 4  }
 0x546   :  { %18 = sbr.rel (!%p16_p5) target bundleno = 1 (0x1), region = 86 }

</bundles_post_ra>
